<compile_context>
chip_gen: v6e
topology: v6e:2x2x1
jax: 0.10.0
libtpu: 0.0.40
codegen_flags: <defaults>
</compile_context>

<pallas_src>
import functools

import jax
import jax.numpy as jnp
import numpy as np
from jax import lax
from jax.experimental import pallas as pl
from jax.experimental.pallas import tpu as pltpu


def basic_block_kernel(x_ref, w1_ref, b1_ref, w2_ref, b2_ref, mask_ref,
                       out_ref, patches_ref, *, W):
    """One batch tile per grid step, channels-x-flat-spatial layout.

    x_ref       : (B, Cp, P)     input (also residual), P = H*W, f32
    w1_ref      : (Cp, 9*Cp)     conv1 weights, BN1 folded, bf16 (tap-major)
    b1_ref      : (Cp, 1)        BN1 folded bias, f32
    w2_ref      : (Cp, 9*Cp)     conv2 weights, BN2 folded, bf16
    b2_ref      : (Cp, 1)        BN2 folded bias, f32
    mask_ref    : (9, P)         per-tap border-validity masks (0/1), f32
    out_ref     : (B, Cp, P)     output, f32
    patches_ref : (9*Cp, B*P)    VMEM scratch: fused im2col patches, bf16
    """
    B, Cp, P = x_ref.shape
    masks = mask_ref[...]                              # hoisted once, f32

    def build_patches(get_src):
        # patches[t*Cp + c, b*P + p] = src_b[c, p + s_t] masked to the valid
        # 3x3 window, with s_t = (dy-1)*W + (dx-1).  Shifts are XLU lane
        # rotations; the masks zero row-wrap / image-border positions, so no
        # tap ever reads across an image boundary.  Stores are bf16, at
        # sublane-aligned offsets (Cp multiple of 16) -> unmasked full stores.
        for b in range(B):
            src = get_src(b)                           # (Cp, P) f32
            for t in range(9):
                dy, dx = divmod(t, 3)
                s = (dy - 1) * W + (dx - 1)
                if s == 0:
                    val = src
                else:
                    val = pltpu.roll(src, shift=(-s) % P, axis=1) * masks[t:t + 1, :]
                patches_ref[t * Cp:(t + 1) * Cp, b * P:(b + 1) * P] = (
                    val.astype(jnp.bfloat16))

    # ---- conv1 (+ folded bn1) + relu : one fused MXU matmul, K = 9*Cp ----
    build_patches(lambda b: x_ref[b])
    mid = jnp.dot(w1_ref[...], patches_ref[...],
                  preferred_element_type=jnp.float32)  # (Cp, B*P) f32
    mid = jnp.maximum(mid + b1_ref[...], 0.0)

    # ---- conv2 (+ folded bn2) ----
    build_patches(lambda b: mid[:, b * P:(b + 1) * P])
    out2 = jnp.dot(w2_ref[...], patches_ref[...],
                   preferred_element_type=jnp.float32) + b2_ref[...]

    # ---- residual add + relu, lane-dense stores (residual re-read from VMEM) ----
    for b in range(B):
        out_ref[b] = jnp.maximum(out2[:, b * P:(b + 1) * P] + x_ref[b], 0.0)


def basic_block_forward(x_nchw, w1_oihw, w2_oihw, scale1, bias1, scale2, bias2,
                        b_tile=None):
    """BasicBlock forward. x_nchw: (N, C, H, W) float32 -> (N, C, H, W)."""
    N, C, H, W = x_nchw.shape
    # Only the stride=1 / dilation=1 / downsample=None configuration is
    # implemented (the module default); anything else would silently break.
    assert w1_oihw.shape == (C, C, 3, 3) and w2_oihw.shape == (C, C, 3, 3), \
        "stride=1, dilation=1, downsample=None requires inplanes == planes"
    P = H * W
    Cp = -(-C // 16) * 16                 # pad channels to bf16 sublane tile

    # NCHW flattened IS (N, C, H*W): free reshape, no transpose.  Tiny
    # zero-pad on the channel axis for aligned slab stores in the kernel.
    x_flat = x_nchw.reshape(N, C, P).astype(jnp.float32)
    if Cp != C:
        x_flat = jnp.pad(x_flat, ((0, 0), (0, Cp - C), (0, 0)))

    def fold(w_oihw, scale):
        # OIHW -> (O, ky, kx, I), fold BN scale into output channels, pad both
        # channel axes to Cp, flatten to (Cp, 9*Cp) tap-major columns.
        w = jnp.transpose(w_oihw, (0, 2, 3, 1)) * scale[:, None, None, None]
        w = jnp.pad(w, ((0, Cp - C), (0, 0), (0, 0), (0, Cp - C)))
        return w.reshape(Cp, 9 * Cp).astype(jnp.bfloat16)

    def fold_bias(bias):
        return jnp.pad(bias.astype(jnp.float32), (0, Cp - C)).reshape(Cp, 1)

    w1f, w2f = fold(w1_oihw, scale1), fold(w2_oihw, scale2)
    b1f, b2f = fold_bias(bias1), fold_bias(bias2)

    # Per-tap border-validity masks over the flattened spatial axis (static).
    hh = np.arange(H).reshape(H, 1)
    ww = np.arange(W).reshape(1, W)
    rows = []
    for dy in range(3):
        for dx in range(3):
            valid = ((hh + dy - 1 >= 0) & (hh + dy - 1 < H)
                     & (ww + dx - 1 >= 0) & (ww + dx - 1 < W))
            rows.append(valid.reshape(P))
    masks = jnp.asarray(np.stack(rows), dtype=jnp.float32)       # (9, P)

    # Pick a batch tile: as many images per grid step as a modest scratch
    # budget allows (amortizes per-step overhead and fills the MXU RHS).
    if b_tile is None:
        per_img = 9 * Cp * P * 2                       # bf16 patches bytes
        b_tile = max(1, min(N, (8 << 20) // max(per_img, 1)))
        while N % b_tile:
            b_tile -= 1

    kernel = functools.partial(basic_block_kernel, W=W)

    out_flat = pl.pallas_call(
        kernel,
        out_shape=jax.ShapeDtypeStruct((N, Cp, P), jnp.float32),
        grid=(N // b_tile,),
        in_specs=[
            pl.BlockSpec((b_tile, Cp, P), lambda n: (n, 0, 0)),   # x
            pl.BlockSpec((Cp, 9 * Cp), lambda n: (0, 0)),         # w1 (BN folded)
            pl.BlockSpec((Cp, 1), lambda n: (0, 0)),              # b1
            pl.BlockSpec((Cp, 9 * Cp), lambda n: (0, 0)),         # w2 (BN folded)
            pl.BlockSpec((Cp, 1), lambda n: (0, 0)),              # b2
            pl.BlockSpec((9, P), lambda n: (0, 0)),               # border masks
        ],
        out_specs=pl.BlockSpec((b_tile, Cp, P), lambda n: (n, 0, 0)),
        scratch_shapes=[pltpu.VMEM((9 * Cp, b_tile * P), jnp.bfloat16)],
        compiler_params=pltpu.CompilerParams(
            dimension_semantics=("parallel",)),
    )(x_flat, w1f, b1f, w2f, b2f, masks)

    return out_flat[:, :C, :].reshape(N, C, H, W)


def reference_forward(x_nchw, w1_oihw, w2_oihw, scale1, bias1, scale2, bias2):
    """Pure-JAX f32 reference (exact module semantics) for correctness check."""
    dn = ('NCHW', 'OIHW', 'NCHW')
    y = lax.conv_general_dilated(x_nchw, w1_oihw, (1, 1), 'SAME',
                                 dimension_numbers=dn)
    y = y * scale1[None, :, None, None] + bias1[None, :, None, None]
    y = jnp.maximum(y, 0.0)
    y = lax.conv_general_dilated(y, w2_oihw, (1, 1), 'SAME',
                                 dimension_numbers=dn)
    y = y * scale2[None, :, None, None] + bias2[None, :, None, None]
    return jnp.maximum(y + x_nchw, 0.0)


if __name__ == "__main__":
    # Small shapes consistent with BasicBlock(inplanes=4, planes=4).
    N, C, H, W = 2, 4, 16, 16
    eps = 1e-5

    key = jax.random.PRNGKey(0)
    k = jax.random.split(key, 10)

    x = jax.random.normal(k[0], (N, C, H, W), dtype=jnp.float32)

    # Deterministic synthetic parameters (nn.Conv2d / nn.BatchNorm2d shapes).
    w1 = jax.random.normal(k[1], (C, C, 3, 3), dtype=jnp.float32) * 0.1
    w2 = jax.random.normal(k[2], (C, C, 3, 3), dtype=jnp.float32) * 0.1
    gamma1 = jax.random.uniform(k[3], (C,), minval=0.5, maxval=1.5)
    beta1 = jax.random.normal(k[4], (C,)) * 0.1
    mean1 = jax.random.normal(k[5], (C,)) * 0.1
    var1 = jax.random.uniform(k[6], (C,), minval=0.5, maxval=1.5)
    gamma2 = jax.random.uniform(k[7], (C,), minval=0.5, maxval=1.5)
    beta2 = jax.random.normal(k[8], (C,)) * 0.1
    mean2 = jax.random.normal(k[9], (C,)) * 0.1
    var2 = jnp.ones((C,), jnp.float32)

    # Fold inference-mode BN into per-channel scale/bias.
    scale1 = gamma1 / jnp.sqrt(var1 + eps)
    bias1 = beta1 - mean1 * scale1
    scale2 = gamma2 / jnp.sqrt(var2 + eps)
    bias2 = beta2 - mean2 * scale2

    out = basic_block_forward(x, w1, w2, scale1, bias1, scale2, bias2)
    out = jax.block_until_ready(out)

    ref = reference_forward(x, w1, w2, scale1, bias1, scale2, bias2)
    ref = jax.block_until_ready(ref)

    # Tolerance loosened vs. f32 reference because conv MXU operands are bf16
    # (weights + im2col patches); accumulation stays f32.
    np.testing.assert_allclose(np.asarray(out), np.asarray(ref),
                               rtol=3e-2, atol=3e-2)
    print("KERNEL_OK")
</pallas_src>

<mosaic_0001>
module attributes {stable_mosaic.version = 11 : i64} {
  func.func @basic_block_kernel(%arg0: i32, %arg1: memref<2x16x256xf32, #tpu.memory_space<vmem>>, %arg2: memref<16x144xbf16, #tpu.memory_space<vmem>>, %arg3: memref<16x1xf32, #tpu.memory_space<vmem>>, %arg4: memref<16x144xbf16, #tpu.memory_space<vmem>>, %arg5: memref<16x1xf32, #tpu.memory_space<vmem>>, %arg6: memref<9x256xf32, #tpu.memory_space<vmem>>, %arg7: memref<2x16x256xf32, #tpu.memory_space<vmem>>, %arg8: memref<144x512xbf16, #tpu.memory_space<vmem>>) attributes {dimension_semantics = [#tpu.dimension_semantics<parallel>], iteration_bounds = array<i64: 1>, scalar_prefetch = 0 : i64, scratch_operands = 1 : i64, tpu.core_type = #tpu.core_type<tc>, window_params = [{transform_indices = @transform_0, window_bounds = array<i64: 2, 16, 256>}, {pipeline_mode = #tpu.pipeline_mode<synchronous>, transform_indices = @transform_1, window_bounds = array<i64: 16, 144>}, {pipeline_mode = #tpu.pipeline_mode<synchronous>, transform_indices = @transform_2, window_bounds = array<i64: 16, 1>}, {pipeline_mode = #tpu.pipeline_mode<synchronous>, transform_indices = @transform_3, window_bounds = array<i64: 16, 144>}, {pipeline_mode = #tpu.pipeline_mode<synchronous>, transform_indices = @transform_4, window_bounds = array<i64: 16, 1>}, {pipeline_mode = #tpu.pipeline_mode<synchronous>, transform_indices = @transform_5, window_bounds = array<i64: 9, 256>}, {transform_indices = @transform_6, window_bounds = array<i64: 2, 16, 256>}]} {
    %c0 = arith.constant 0 : index
    %c0_0 = arith.constant 0 : index
    %0 = vector.load %arg6[%c0, %c0_0] : memref<9x256xf32, #tpu.memory_space<vmem>>, vector<9x256xf32>
    %c0_1 = arith.constant 0 : index
    %c0_2 = arith.constant 0 : index
    %c0_3 = arith.constant 0 : index
    %1 = vector.load %arg1[%c0_1, %c0_2, %c0_3] : memref<2x16x256xf32, #tpu.memory_space<vmem>>, vector<1x16x256xf32>
    %2 = vector.shape_cast %1 : vector<1x16x256xf32> to vector<16x256xf32>
    %c17_i32 = arith.constant 17 : i32
    %3 = tpu.dynamic_rotate %2 by %c17_i32 dim 1 : vector<16x256xf32>, i32 -> vector<16x256xf32>
    %4 = vector.extract_strided_slice %0 {offsets = [0, 0], sizes = [1, 256], strides = [1, 1]} : vector<9x256xf32> to vector<1x256xf32>
    %5 = vector.broadcast %4 : vector<1x256xf32> to vector<16x256xf32>
    %6 = arith.mulf %3, %5 : vector<16x256xf32>
    %7 = arith.truncf %6 : vector<16x256xf32> to vector<16x256xbf16>
    %c0_4 = arith.constant 0 : index
    %c0_5 = arith.constant 0 : index
    %8 = vector.load %arg8[%c0_4, %c0_5] : memref<144x512xbf16, #tpu.memory_space<vmem>>, vector<16x256xbf16>
    tpu.vector_store %arg8[%c0_4, %c0_5], %7 {strides = array<i32>} : memref<144x512xbf16, #tpu.memory_space<vmem>>, vector<16x256xbf16>,
    %c16_i32 = arith.constant 16 : i32
    %9 = tpu.dynamic_rotate %2 by %c16_i32 dim 1 : vector<16x256xf32>, i32 -> vector<16x256xf32>
    %10 = vector.extract_strided_slice %0 {offsets = [1, 0], sizes = [1, 256], strides = [1, 1]} : vector<9x256xf32> to vector<1x256xf32>
    %11 = vector.broadcast %10 : vector<1x256xf32> to vector<16x256xf32>
    %12 = arith.mulf %9, %11 : vector<16x256xf32>
    %13 = arith.truncf %12 : vector<16x256xf32> to vector<16x256xbf16>
    %c16 = arith.constant 16 : index
    %c0_6 = arith.constant 0 : index
    %14 = vector.load %arg8[%c16, %c0_6] : memref<144x512xbf16, #tpu.memory_space<vmem>>, vector<16x256xbf16>
    tpu.vector_store %arg8[%c16, %c0_6], %13 {strides = array<i32>} : memref<144x512xbf16, #tpu.memory_space<vmem>>, vector<16x256xbf16>,
    %c15_i32 = arith.constant 15 : i32
    %15 = tpu.dynamic_rotate %2 by %c15_i32 dim 1 : vector<16x256xf32>, i32 -> vector<16x256xf32>
    %16 = vector.extract_strided_slice %0 {offsets = [2, 0], sizes = [1, 256], strides = [1, 1]} : vector<9x256xf32> to vector<1x256xf32>
    %17 = vector.broadcast %16 : vector<1x256xf32> to vector<16x256xf32>
    %18 = arith.mulf %15, %17 : vector<16x256xf32>
    %19 = arith.truncf %18 : vector<16x256xf32> to vector<16x256xbf16>
    %c32 = arith.constant 32 : index
    %c0_7 = arith.constant 0 : index
    %20 = vector.load %arg8[%c32, %c0_7] : memref<144x512xbf16, #tpu.memory_space<vmem>>, vector<16x256xbf16>
    tpu.vector_store %arg8[%c32, %c0_7], %19 {strides = array<i32>} : memref<144x512xbf16, #tpu.memory_space<vmem>>, vector<16x256xbf16>,
    %c1_i32 = arith.constant 1 : i32
    %21 = tpu.dynamic_rotate %2 by %c1_i32 dim 1 : vector<16x256xf32>, i32 -> vector<16x256xf32>
    %22 = vector.extract_strided_slice %0 {offsets = [3, 0], sizes = [1, 256], strides = [1, 1]} : vector<9x256xf32> to vector<1x256xf32>
    %23 = vector.broadcast %22 : vector<1x256xf32> to vector<16x256xf32>
    %24 = arith.mulf %21, %23 : vector<16x256xf32>
    %25 = arith.truncf %24 : vector<16x256xf32> to vector<16x256xbf16>
    %c48 = arith.constant 48 : index
    %c0_8 = arith.constant 0 : index
    %26 = vector.load %arg8[%c48, %c0_8] : memref<144x512xbf16, #tpu.memory_space<vmem>>, vector<16x256xbf16>
    tpu.vector_store %arg8[%c48, %c0_8], %25 {strides = array<i32>} : memref<144x512xbf16, #tpu.memory_space<vmem>>, vector<16x256xbf16>,
    %27 = arith.truncf %2 : vector<16x256xf32> to vector<16x256xbf16>
    %c64 = arith.constant 64 : index
    %c0_9 = arith.constant 0 : index
    %28 = vector.load %arg8[%c64, %c0_9] : memref<144x512xbf16, #tpu.memory_space<vmem>>, vector<16x256xbf16>
    tpu.vector_store %arg8[%c64, %c0_9], %27 {strides = array<i32>} : memref<144x512xbf16, #tpu.memory_space<vmem>>, vector<16x256xbf16>,
    %c255_i32 = arith.constant 255 : i32
    %29 = tpu.dynamic_rotate %2 by %c255_i32 dim 1 : vector<16x256xf32>, i32 -> vector<16x256xf32>
    %30 = vector.extract_strided_slice %0 {offsets = [5, 0], sizes = [1, 256], strides = [1, 1]} : vector<9x256xf32> to vector<1x256xf32>
    %31 = vector.broadcast %30 : vector<1x256xf32> to vector<16x256xf32>
    %32 = arith.mulf %29, %31 : vector<16x256xf32>
    %33 = arith.truncf %32 : vector<16x256xf32> to vector<16x256xbf16>
    %c80 = arith.constant 80 : index
    %c0_10 = arith.constant 0 : index
    %34 = vector.load %arg8[%c80, %c0_10] : memref<144x512xbf16, #tpu.memory_space<vmem>>, vector<16x256xbf16>
    tpu.vector_store %arg8[%c80, %c0_10], %33 {strides = array<i32>} : memref<144x512xbf16, #tpu.memory_space<vmem>>, vector<16x256xbf16>,
    %c241_i32 = arith.constant 241 : i32
    %35 = tpu.dynamic_rotate %2 by %c241_i32 dim 1 : vector<16x256xf32>, i32 -> vector<16x256xf32>
    %36 = vector.extract_strided_slice %0 {offsets = [6, 0], sizes = [1, 256], strides = [1, 1]} : vector<9x256xf32> to vector<1x256xf32>
    %37 = vector.broadcast %36 : vector<1x256xf32> to vector<16x256xf32>
    %38 = arith.mulf %35, %37 : vector<16x256xf32>
    %39 = arith.truncf %38 : vector<16x256xf32> to vector<16x256xbf16>
    %c96 = arith.constant 96 : index
    %c0_11 = arith.constant 0 : index
    %40 = vector.load %arg8[%c96, %c0_11] : memref<144x512xbf16, #tpu.memory_space<vmem>>, vector<16x256xbf16>
    tpu.vector_store %arg8[%c96, %c0_11], %39 {strides = array<i32>} : memref<144x512xbf16, #tpu.memory_space<vmem>>, vector<16x256xbf16>,
    %c240_i32 = arith.constant 240 : i32
    %41 = tpu.dynamic_rotate %2 by %c240_i32 dim 1 : vector<16x256xf32>, i32 -> vector<16x256xf32>
    %42 = vector.extract_strided_slice %0 {offsets = [7, 0], sizes = [1, 256], strides = [1, 1]} : vector<9x256xf32> to vector<1x256xf32>
    %43 = vector.broadcast %42 : vector<1x256xf32> to vector<16x256xf32>
    %44 = arith.mulf %41, %43 : vector<16x256xf32>
    %45 = arith.truncf %44 : vector<16x256xf32> to vector<16x256xbf16>
    %c112 = arith.constant 112 : index
    %c0_12 = arith.constant 0 : index
    %46 = vector.load %arg8[%c112, %c0_12] : memref<144x512xbf16, #tpu.memory_space<vmem>>, vector<16x256xbf16>
    tpu.vector_store %arg8[%c112, %c0_12], %45 {strides = array<i32>} : memref<144x512xbf16, #tpu.memory_space<vmem>>, vector<16x256xbf16>,
    %c239_i32 = arith.constant 239 : i32
    %47 = tpu.dynamic_rotate %2 by %c239_i32 dim 1 : vector<16x256xf32>, i32 -> vector<16x256xf32>
    %48 = vector.extract_strided_slice %0 {offsets = [8, 0], sizes = [1, 256], strides = [1, 1]} : vector<9x256xf32> to vector<1x256xf32>
    %49 = vector.broadcast %48 : vector<1x256xf32> to vector<16x256xf32>
    %50 = arith.mulf %47, %49 : vector<16x256xf32>
    %51 = arith.truncf %50 : vector<16x256xf32> to vector<16x256xbf16>
    %c128 = arith.constant 128 : index
    %c0_13 = arith.constant 0 : index
    %52 = vector.load %arg8[%c128, %c0_13] : memref<144x512xbf16, #tpu.memory_space<vmem>>, vector<16x256xbf16>
    tpu.vector_store %arg8[%c128, %c0_13], %51 {strides = array<i32>} : memref<144x512xbf16, #tpu.memory_space<vmem>>, vector<16x256xbf16>,
    %c1 = arith.constant 1 : index
    %c0_14 = arith.constant 0 : index
    %c0_15 = arith.constant 0 : index
    %53 = vector.load %arg1[%c1, %c0_14, %c0_15] : memref<2x16x256xf32, #tpu.memory_space<vmem>>, vector<1x16x256xf32>
    %54 = vector.shape_cast %53 : vector<1x16x256xf32> to vector<16x256xf32>
    %c17_i32_16 = arith.constant 17 : i32
    %55 = tpu.dynamic_rotate %54 by %c17_i32_16 dim 1 : vector<16x256xf32>, i32 -> vector<16x256xf32>
    %56 = vector.extract_strided_slice %0 {offsets = [0, 0], sizes = [1, 256], strides = [1, 1]} : vector<9x256xf32> to vector<1x256xf32>
    %57 = vector.broadcast %56 : vector<1x256xf32> to vector<16x256xf32>
    %58 = arith.mulf %55, %57 : vector<16x256xf32>
    %59 = arith.truncf %58 : vector<16x256xf32> to vector<16x256xbf16>
    %c0_17 = arith.constant 0 : index
    %c256 = arith.constant 256 : index
    %60 = vector.load %arg8[%c0_17, %c256] : memref<144x512xbf16, #tpu.memory_space<vmem>>, vector<16x256xbf16>
    tpu.vector_store %arg8[%c0_17, %c256], %59 {strides = array<i32>} : memref<144x512xbf16, #tpu.memory_space<vmem>>, vector<16x256xbf16>,
    %c16_i32_18 = arith.constant 16 : i32
    %61 = tpu.dynamic_rotate %54 by %c16_i32_18 dim 1 : vector<16x256xf32>, i32 -> vector<16x256xf32>
    %62 = vector.extract_strided_slice %0 {offsets = [1, 0], sizes = [1, 256], strides = [1, 1]} : vector<9x256xf32> to vector<1x256xf32>
    %63 = vector.broadcast %62 : vector<1x256xf32> to vector<16x256xf32>
    %64 = arith.mulf %61, %63 : vector<16x256xf32>
    %65 = arith.truncf %64 : vector<16x256xf32> to vector<16x256xbf16>
    %c16_19 = arith.constant 16 : index
    %c256_20 = arith.constant 256 : index
    %66 = vector.load %arg8[%c16_19, %c256_20] : memref<144x512xbf16, #tpu.memory_space<vmem>>, vector<16x256xbf16>
    tpu.vector_store %arg8[%c16_19, %c256_20], %65 {strides = array<i32>} : memref<144x512xbf16, #tpu.memory_space<vmem>>, vector<16x256xbf16>,
    %c15_i32_21 = arith.constant 15 : i32
    %67 = tpu.dynamic_rotate %54 by %c15_i32_21 dim 1 : vector<16x256xf32>, i32 -> vector<16x256xf32>
    %68 = vector.extract_strided_slice %0 {offsets = [2, 0], sizes = [1, 256], strides = [1, 1]} : vector<9x256xf32> to vector<1x256xf32>
    %69 = vector.broadcast %68 : vector<1x256xf32> to vector<16x256xf32>
    %70 = arith.mulf %67, %69 : vector<16x256xf32>
    %71 = arith.truncf %70 : vector<16x256xf32> to vector<16x256xbf16>
    %c32_22 = arith.constant 32 : index
    %c256_23 = arith.constant 256 : index
    %72 = vector.load %arg8[%c32_22, %c256_23] : memref<144x512xbf16, #tpu.memory_space<vmem>>, vector<16x256xbf16>
    tpu.vector_store %arg8[%c32_22, %c256_23], %71 {strides = array<i32>} : memref<144x512xbf16, #tpu.memory_space<vmem>>, vector<16x256xbf16>,
    %c1_i32_24 = arith.constant 1 : i32
    %73 = tpu.dynamic_rotate %54 by %c1_i32_24 dim 1 : vector<16x256xf32>, i32 -> vector<16x256xf32>
    %74 = vector.extract_strided_slice %0 {offsets = [3, 0], sizes = [1, 256], strides = [1, 1]} : vector<9x256xf32> to vector<1x256xf32>
    %75 = vector.broadcast %74 : vector<1x256xf32> to vector<16x256xf32>
    %76 = arith.mulf %73, %75 : vector<16x256xf32>
    %77 = arith.truncf %76 : vector<16x256xf32> to vector<16x256xbf16>
    %c48_25 = arith.constant 48 : index
    %c256_26 = arith.constant 256 : index
    %78 = vector.load %arg8[%c48_25, %c256_26] : memref<144x512xbf16, #tpu.memory_space<vmem>>, vector<16x256xbf16>
    tpu.vector_store %arg8[%c48_25, %c256_26], %77 {strides = array<i32>} : memref<144x512xbf16, #tpu.memory_space<vmem>>, vector<16x256xbf16>,
    %79 = arith.truncf %54 : vector<16x256xf32> to vector<16x256xbf16>
    %c64_27 = arith.constant 64 : index
    %c256_28 = arith.constant 256 : index
    %80 = vector.load %arg8[%c64_27, %c256_28] : memref<144x512xbf16, #tpu.memory_space<vmem>>, vector<16x256xbf16>
    tpu.vector_store %arg8[%c64_27, %c256_28], %79 {strides = array<i32>} : memref<144x512xbf16, #tpu.memory_space<vmem>>, vector<16x256xbf16>,
    %c255_i32_29 = arith.constant 255 : i32
    %81 = tpu.dynamic_rotate %54 by %c255_i32_29 dim 1 : vector<16x256xf32>, i32 -> vector<16x256xf32>
    %82 = vector.extract_strided_slice %0 {offsets = [5, 0], sizes = [1, 256], strides = [1, 1]} : vector<9x256xf32> to vector<1x256xf32>
    %83 = vector.broadcast %82 : vector<1x256xf32> to vector<16x256xf32>
    %84 = arith.mulf %81, %83 : vector<16x256xf32>
    %85 = arith.truncf %84 : vector<16x256xf32> to vector<16x256xbf16>
    %c80_30 = arith.constant 80 : index
    %c256_31 = arith.constant 256 : index
    %86 = vector.load %arg8[%c80_30, %c256_31] : memref<144x512xbf16, #tpu.memory_space<vmem>>, vector<16x256xbf16>
    tpu.vector_store %arg8[%c80_30, %c256_31], %85 {strides = array<i32>} : memref<144x512xbf16, #tpu.memory_space<vmem>>, vector<16x256xbf16>,
    %c241_i32_32 = arith.constant 241 : i32
    %87 = tpu.dynamic_rotate %54 by %c241_i32_32 dim 1 : vector<16x256xf32>, i32 -> vector<16x256xf32>
    %88 = vector.extract_strided_slice %0 {offsets = [6, 0], sizes = [1, 256], strides = [1, 1]} : vector<9x256xf32> to vector<1x256xf32>
    %89 = vector.broadcast %88 : vector<1x256xf32> to vector<16x256xf32>
    %90 = arith.mulf %87, %89 : vector<16x256xf32>
    %91 = arith.truncf %90 : vector<16x256xf32> to vector<16x256xbf16>
    %c96_33 = arith.constant 96 : index
    %c256_34 = arith.constant 256 : index
    %92 = vector.load %arg8[%c96_33, %c256_34] : memref<144x512xbf16, #tpu.memory_space<vmem>>, vector<16x256xbf16>
    tpu.vector_store %arg8[%c96_33, %c256_34], %91 {strides = array<i32>} : memref<144x512xbf16, #tpu.memory_space<vmem>>, vector<16x256xbf16>,
    %c240_i32_35 = arith.constant 240 : i32
    %93 = tpu.dynamic_rotate %54 by %c240_i32_35 dim 1 : vector<16x256xf32>, i32 -> vector<16x256xf32>
    %94 = vector.extract_strided_slice %0 {offsets = [7, 0], sizes = [1, 256], strides = [1, 1]} : vector<9x256xf32> to vector<1x256xf32>
    %95 = vector.broadcast %94 : vector<1x256xf32> to vector<16x256xf32>
    %96 = arith.mulf %93, %95 : vector<16x256xf32>
    %97 = arith.truncf %96 : vector<16x256xf32> to vector<16x256xbf16>
    %c112_36 = arith.constant 112 : index
    %c256_37 = arith.constant 256 : index
    %98 = vector.load %arg8[%c112_36, %c256_37] : memref<144x512xbf16, #tpu.memory_space<vmem>>, vector<16x256xbf16>
    tpu.vector_store %arg8[%c112_36, %c256_37], %97 {strides = array<i32>} : memref<144x512xbf16, #tpu.memory_space<vmem>>, vector<16x256xbf16>,
    %c239_i32_38 = arith.constant 239 : i32
    %99 = tpu.dynamic_rotate %54 by %c239_i32_38 dim 1 : vector<16x256xf32>, i32 -> vector<16x256xf32>
    %100 = vector.extract_strided_slice %0 {offsets = [8, 0], sizes = [1, 256], strides = [1, 1]} : vector<9x256xf32> to vector<1x256xf32>
    %101 = vector.broadcast %100 : vector<1x256xf32> to vector<16x256xf32>
    %102 = arith.mulf %99, %101 : vector<16x256xf32>
    %103 = arith.truncf %102 : vector<16x256xf32> to vector<16x256xbf16>
    %c128_39 = arith.constant 128 : index
    %c256_40 = arith.constant 256 : index
    %104 = vector.load %arg8[%c128_39, %c256_40] : memref<144x512xbf16, #tpu.memory_space<vmem>>, vector<16x256xbf16>
    tpu.vector_store %arg8[%c128_39, %c256_40], %103 {strides = array<i32>} : memref<144x512xbf16, #tpu.memory_space<vmem>>, vector<16x256xbf16>,
    %c0_41 = arith.constant 0 : index
    %c0_42 = arith.constant 0 : index
    %105 = vector.load %arg2[%c0_41, %c0_42] : memref<16x144xbf16, #tpu.memory_space<vmem>>, vector<16x144xbf16>
    %c0_43 = arith.constant 0 : index
    %c0_44 = arith.constant 0 : index
    %106 = vector.load %arg8[%c0_43, %c0_44] : memref<144x512xbf16, #tpu.memory_space<vmem>>, vector<144x512xbf16>
    %cst = arith.constant dense<0.000000e+00> : vector<16x512xf32>
    %107 = tpu.matmul %105, %106, %cst {dimension_numbers = #tpu.dot_dimension_numbers<[1], [0], [0], [1], [0, 0, 1, 1], [], []>} : vector<16x144xbf16>, vector<144x512xbf16>, vector<16x512xf32> -> vector<16x512xf32>
    %c0_45 = arith.constant 0 : index
    %c0_46 = arith.constant 0 : index
    %108 = vector.load %arg3[%c0_45, %c0_46] : memref<16x1xf32, #tpu.memory_space<vmem>>, vector<16x1xf32>
    %109 = vector.broadcast %108 : vector<16x1xf32> to vector<16x512xf32>
    %110 = arith.addf %107, %109 : vector<16x512xf32>
    %cst_47 = arith.constant 0.000000e+00 : f32
    %111 = vector.broadcast %cst_47 : f32 to vector<16x512xf32>
    %112 = arith.maximumf %110, %111 : vector<16x512xf32>
    %113 = vector.extract_strided_slice %112 {offsets = [0, 0], sizes = [16, 256], strides = [1, 1]} : vector<16x512xf32> to vector<16x256xf32>
    %c17_i32_48 = arith.constant 17 : i32
    %114 = tpu.dynamic_rotate %113 by %c17_i32_48 dim 1 : vector<16x256xf32>, i32 -> vector<16x256xf32>
    %115 = vector.extract_strided_slice %0 {offsets = [0, 0], sizes = [1, 256], strides = [1, 1]} : vector<9x256xf32> to vector<1x256xf32>
    %116 = vector.broadcast %115 : vector<1x256xf32> to vector<16x256xf32>
    %117 = arith.mulf %114, %116 : vector<16x256xf32>
    %118 = arith.truncf %117 : vector<16x256xf32> to vector<16x256xbf16>
    %c0_49 = arith.constant 0 : index
    %c0_50 = arith.constant 0 : index
    %119 = vector.load %arg8[%c0_49, %c0_50] : memref<144x512xbf16, #tpu.memory_space<vmem>>, vector<16x256xbf16>
    tpu.vector_store %arg8[%c0_49, %c0_50], %118 {strides = array<i32>} : memref<144x512xbf16, #tpu.memory_space<vmem>>, vector<16x256xbf16>,
    %c16_i32_51 = arith.constant 16 : i32
    %120 = tpu.dynamic_rotate %113 by %c16_i32_51 dim 1 : vector<16x256xf32>, i32 -> vector<16x256xf32>
    %121 = vector.extract_strided_slice %0 {offsets = [1, 0], sizes = [1, 256], strides = [1, 1]} : vector<9x256xf32> to vector<1x256xf32>
    %122 = vector.broadcast %121 : vector<1x256xf32> to vector<16x256xf32>
    %123 = arith.mulf %120, %122 : vector<16x256xf32>
    %124 = arith.truncf %123 : vector<16x256xf32> to vector<16x256xbf16>
    %c16_52 = arith.constant 16 : index
    %c0_53 = arith.constant 0 : index
    %125 = vector.load %arg8[%c16_52, %c0_53] : memref<144x512xbf16, #tpu.memory_space<vmem>>, vector<16x256xbf16>
    tpu.vector_store %arg8[%c16_52, %c0_53], %124 {strides = array<i32>} : memref<144x512xbf16, #tpu.memory_space<vmem>>, vector<16x256xbf16>,
    %c15_i32_54 = arith.constant 15 : i32
    %126 = tpu.dynamic_rotate %113 by %c15_i32_54 dim 1 : vector<16x256xf32>, i32 -> vector<16x256xf32>
    %127 = vector.extract_strided_slice %0 {offsets = [2, 0], sizes = [1, 256], strides = [1, 1]} : vector<9x256xf32> to vector<1x256xf32>
    %128 = vector.broadcast %127 : vector<1x256xf32> to vector<16x256xf32>
    %129 = arith.mulf %126, %128 : vector<16x256xf32>
    %130 = arith.truncf %129 : vector<16x256xf32> to vector<16x256xbf16>
    %c32_55 = arith.constant 32 : index
    %c0_56 = arith.constant 0 : index
    %131 = vector.load %arg8[%c32_55, %c0_56] : memref<144x512xbf16, #tpu.memory_space<vmem>>, vector<16x256xbf16>
    tpu.vector_store %arg8[%c32_55, %c0_56], %130 {strides = array<i32>} : memref<144x512xbf16, #tpu.memory_space<vmem>>, vector<16x256xbf16>,
    %c1_i32_57 = arith.constant 1 : i32
    %132 = tpu.dynamic_rotate %113 by %c1_i32_57 dim 1 : vector<16x256xf32>, i32 -> vector<16x256xf32>
    %133 = vector.extract_strided_slice %0 {offsets = [3, 0], sizes = [1, 256], strides = [1, 1]} : vector<9x256xf32> to vector<1x256xf32>
    %134 = vector.broadcast %133 : vector<1x256xf32> to vector<16x256xf32>
    %135 = arith.mulf %132, %134 : vector<16x256xf32>
    %136 = arith.truncf %135 : vector<16x256xf32> to vector<16x256xbf16>
    %c48_58 = arith.constant 48 : index
    %c0_59 = arith.constant 0 : index
    %137 = vector.load %arg8[%c48_58, %c0_59] : memref<144x512xbf16, #tpu.memory_space<vmem>>, vector<16x256xbf16>
    tpu.vector_store %arg8[%c48_58, %c0_59], %136 {strides = array<i32>} : memref<144x512xbf16, #tpu.memory_space<vmem>>, vector<16x256xbf16>,
    %138 = arith.truncf %113 : vector<16x256xf32> to vector<16x256xbf16>
    %c64_60 = arith.constant 64 : index
    %c0_61 = arith.constant 0 : index
    %139 = vector.load %arg8[%c64_60, %c0_61] : memref<144x512xbf16, #tpu.memory_space<vmem>>, vector<16x256xbf16>
    tpu.vector_store %arg8[%c64_60, %c0_61], %138 {strides = array<i32>} : memref<144x512xbf16, #tpu.memory_space<vmem>>, vector<16x256xbf16>,
    %c255_i32_62 = arith.constant 255 : i32
    %140 = tpu.dynamic_rotate %113 by %c255_i32_62 dim 1 : vector<16x256xf32>, i32 -> vector<16x256xf32>
    %141 = vector.extract_strided_slice %0 {offsets = [5, 0], sizes = [1, 256], strides = [1, 1]} : vector<9x256xf32> to vector<1x256xf32>
    %142 = vector.broadcast %141 : vector<1x256xf32> to vector<16x256xf32>
    %143 = arith.mulf %140, %142 : vector<16x256xf32>
    %144 = arith.truncf %143 : vector<16x256xf32> to vector<16x256xbf16>
    %c80_63 = arith.constant 80 : index
    %c0_64 = arith.constant 0 : index
    %145 = vector.load %arg8[%c80_63, %c0_64] : memref<144x512xbf16, #tpu.memory_space<vmem>>, vector<16x256xbf16>
    tpu.vector_store %arg8[%c80_63, %c0_64], %144 {strides = array<i32>} : memref<144x512xbf16, #tpu.memory_space<vmem>>, vector<16x256xbf16>,
    %c241_i32_65 = arith.constant 241 : i32
    %146 = tpu.dynamic_rotate %113 by %c241_i32_65 dim 1 : vector<16x256xf32>, i32 -> vector<16x256xf32>
    %147 = vector.extract_strided_slice %0 {offsets = [6, 0], sizes = [1, 256], strides = [1, 1]} : vector<9x256xf32> to vector<1x256xf32>
    %148 = vector.broadcast %147 : vector<1x256xf32> to vector<16x256xf32>
    %149 = arith.mulf %146, %148 : vector<16x256xf32>
    %150 = arith.truncf %149 : vector<16x256xf32> to vector<16x256xbf16>
    %c96_66 = arith.constant 96 : index
    %c0_67 = arith.constant 0 : index
    %151 = vector.load %arg8[%c96_66, %c0_67] : memref<144x512xbf16, #tpu.memory_space<vmem>>, vector<16x256xbf16>
    tpu.vector_store %arg8[%c96_66, %c0_67], %150 {strides = array<i32>} : memref<144x512xbf16, #tpu.memory_space<vmem>>, vector<16x256xbf16>,
    %c240_i32_68 = arith.constant 240 : i32
    %152 = tpu.dynamic_rotate %113 by %c240_i32_68 dim 1 : vector<16x256xf32>, i32 -> vector<16x256xf32>
    %153 = vector.extract_strided_slice %0 {offsets = [7, 0], sizes = [1, 256], strides = [1, 1]} : vector<9x256xf32> to vector<1x256xf32>
    %154 = vector.broadcast %153 : vector<1x256xf32> to vector<16x256xf32>
    %155 = arith.mulf %152, %154 : vector<16x256xf32>
    %156 = arith.truncf %155 : vector<16x256xf32> to vector<16x256xbf16>
    %c112_69 = arith.constant 112 : index
    %c0_70 = arith.constant 0 : index
    %157 = vector.load %arg8[%c112_69, %c0_70] : memref<144x512xbf16, #tpu.memory_space<vmem>>, vector<16x256xbf16>
    tpu.vector_store %arg8[%c112_69, %c0_70], %156 {strides = array<i32>} : memref<144x512xbf16, #tpu.memory_space<vmem>>, vector<16x256xbf16>,
    %c239_i32_71 = arith.constant 239 : i32
    %158 = tpu.dynamic_rotate %113 by %c239_i32_71 dim 1 : vector<16x256xf32>, i32 -> vector<16x256xf32>
    %159 = vector.extract_strided_slice %0 {offsets = [8, 0], sizes = [1, 256], strides = [1, 1]} : vector<9x256xf32> to vector<1x256xf32>
    %160 = vector.broadcast %159 : vector<1x256xf32> to vector<16x256xf32>
    %161 = arith.mulf %158, %160 : vector<16x256xf32>
    %162 = arith.truncf %161 : vector<16x256xf32> to vector<16x256xbf16>
    %c128_72 = arith.constant 128 : index
    %c0_73 = arith.constant 0 : index
    %163 = vector.load %arg8[%c128_72, %c0_73] : memref<144x512xbf16, #tpu.memory_space<vmem>>, vector<16x256xbf16>
    tpu.vector_store %arg8[%c128_72, %c0_73], %162 {strides = array<i32>} : memref<144x512xbf16, #tpu.memory_space<vmem>>, vector<16x256xbf16>,
    %164 = vector.extract_strided_slice %112 {offsets = [0, 256], sizes = [16, 256], strides = [1, 1]} : vector<16x512xf32> to vector<16x256xf32>
    %c17_i32_74 = arith.constant 17 : i32
    %165 = tpu.dynamic_rotate %164 by %c17_i32_74 dim 1 : vector<16x256xf32>, i32 -> vector<16x256xf32>
    %166 = vector.extract_strided_slice %0 {offsets = [0, 0], sizes = [1, 256], strides = [1, 1]} : vector<9x256xf32> to vector<1x256xf32>
    %167 = vector.broadcast %166 : vector<1x256xf32> to vector<16x256xf32>
    %168 = arith.mulf %165, %167 : vector<16x256xf32>
    %169 = arith.truncf %168 : vector<16x256xf32> to vector<16x256xbf16>
    %c0_75 = arith.constant 0 : index
    %c256_76 = arith.constant 256 : index
    %170 = vector.load %arg8[%c0_75, %c256_76] : memref<144x512xbf16, #tpu.memory_space<vmem>>, vector<16x256xbf16>
    tpu.vector_store %arg8[%c0_75, %c256_76], %169 {strides = array<i32>} : memref<144x512xbf16, #tpu.memory_space<vmem>>, vector<16x256xbf16>,
    %c16_i32_77 = arith.constant 16 : i32
    %171 = tpu.dynamic_rotate %164 by %c16_i32_77 dim 1 : vector<16x256xf32>, i32 -> vector<16x256xf32>
    %172 = vector.extract_strided_slice %0 {offsets = [1, 0], sizes = [1, 256], strides = [1, 1]} : vector<9x256xf32> to vector<1x256xf32>
    %173 = vector.broadcast %172 : vector<1x256xf32> to vector<16x256xf32>
    %174 = arith.mulf %171, %173 : vector<16x256xf32>
    %175 = arith.truncf %174 : vector<16x256xf32> to vector<16x256xbf16>
    %c16_78 = arith.constant 16 : index
    %c256_79 = arith.constant 256 : index
    %176 = vector.load %arg8[%c16_78, %c256_79] : memref<144x512xbf16, #tpu.memory_space<vmem>>, vector<16x256xbf16>
    tpu.vector_store %arg8[%c16_78, %c256_79], %175 {strides = array<i32>} : memref<144x512xbf16, #tpu.memory_space<vmem>>, vector<16x256xbf16>,
    %c15_i32_80 = arith.constant 15 : i32
    %177 = tpu.dynamic_rotate %164 by %c15_i32_80 dim 1 : vector<16x256xf32>, i32 -> vector<16x256xf32>
    %178 = vector.extract_strided_slice %0 {offsets = [2, 0], sizes = [1, 256], strides = [1, 1]} : vector<9x256xf32> to vector<1x256xf32>
    %179 = vector.broadcast %178 : vector<1x256xf32> to vector<16x256xf32>
    %180 = arith.mulf %177, %179 : vector<16x256xf32>
    %181 = arith.truncf %180 : vector<16x256xf32> to vector<16x256xbf16>
    %c32_81 = arith.constant 32 : index
    %c256_82 = arith.constant 256 : index
    %182 = vector.load %arg8[%c32_81, %c256_82] : memref<144x512xbf16, #tpu.memory_space<vmem>>, vector<16x256xbf16>
    tpu.vector_store %arg8[%c32_81, %c256_82], %181 {strides = array<i32>} : memref<144x512xbf16, #tpu.memory_space<vmem>>, vector<16x256xbf16>,
    %c1_i32_83 = arith.constant 1 : i32
    %183 = tpu.dynamic_rotate %164 by %c1_i32_83 dim 1 : vector<16x256xf32>, i32 -> vector<16x256xf32>
    %184 = vector.extract_strided_slice %0 {offsets = [3, 0], sizes = [1, 256], strides = [1, 1]} : vector<9x256xf32> to vector<1x256xf32>
    %185 = vector.broadcast %184 : vector<1x256xf32> to vector<16x256xf32>
    %186 = arith.mulf %183, %185 : vector<16x256xf32>
    %187 = arith.truncf %186 : vector<16x256xf32> to vector<16x256xbf16>
    %c48_84 = arith.constant 48 : index
    %c256_85 = arith.constant 256 : index
    %188 = vector.load %arg8[%c48_84, %c256_85] : memref<144x512xbf16, #tpu.memory_space<vmem>>, vector<16x256xbf16>
    tpu.vector_store %arg8[%c48_84, %c256_85], %187 {strides = array<i32>} : memref<144x512xbf16, #tpu.memory_space<vmem>>, vector<16x256xbf16>,
    %189 = arith.truncf %164 : vector<16x256xf32> to vector<16x256xbf16>
    %c64_86 = arith.constant 64 : index
    %c256_87 = arith.constant 256 : index
    %190 = vector.load %arg8[%c64_86, %c256_87] : memref<144x512xbf16, #tpu.memory_space<vmem>>, vector<16x256xbf16>
    tpu.vector_store %arg8[%c64_86, %c256_87], %189 {strides = array<i32>} : memref<144x512xbf16, #tpu.memory_space<vmem>>, vector<16x256xbf16>,
    %c255_i32_88 = arith.constant 255 : i32
    %191 = tpu.dynamic_rotate %164 by %c255_i32_88 dim 1 : vector<16x256xf32>, i32 -> vector<16x256xf32>
    %192 = vector.extract_strided_slice %0 {offsets = [5, 0], sizes = [1, 256], strides = [1, 1]} : vector<9x256xf32> to vector<1x256xf32>
    %193 = vector.broadcast %192 : vector<1x256xf32> to vector<16x256xf32>
    %194 = arith.mulf %191, %193 : vector<16x256xf32>
    %195 = arith.truncf %194 : vector<16x256xf32> to vector<16x256xbf16>
    %c80_89 = arith.constant 80 : index
    %c256_90 = arith.constant 256 : index
    %196 = vector.load %arg8[%c80_89, %c256_90] : memref<144x512xbf16, #tpu.memory_space<vmem>>, vector<16x256xbf16>
    tpu.vector_store %arg8[%c80_89, %c256_90], %195 {strides = array<i32>} : memref<144x512xbf16, #tpu.memory_space<vmem>>, vector<16x256xbf16>,
    %c241_i32_91 = arith.constant 241 : i32
    %197 = tpu.dynamic_rotate %164 by %c241_i32_91 dim 1 : vector<16x256xf32>, i32 -> vector<16x256xf32>
    %198 = vector.extract_strided_slice %0 {offsets = [6, 0], sizes = [1, 256], strides = [1, 1]} : vector<9x256xf32> to vector<1x256xf32>
    %199 = vector.broadcast %198 : vector<1x256xf32> to vector<16x256xf32>
    %200 = arith.mulf %197, %199 : vector<16x256xf32>
    %201 = arith.truncf %200 : vector<16x256xf32> to vector<16x256xbf16>
    %c96_92 = arith.constant 96 : index
    %c256_93 = arith.constant 256 : index
    %202 = vector.load %arg8[%c96_92, %c256_93] : memref<144x512xbf16, #tpu.memory_space<vmem>>, vector<16x256xbf16>
    tpu.vector_store %arg8[%c96_92, %c256_93], %201 {strides = array<i32>} : memref<144x512xbf16, #tpu.memory_space<vmem>>, vector<16x256xbf16>,
    %c240_i32_94 = arith.constant 240 : i32
    %203 = tpu.dynamic_rotate %164 by %c240_i32_94 dim 1 : vector<16x256xf32>, i32 -> vector<16x256xf32>
    %204 = vector.extract_strided_slice %0 {offsets = [7, 0], sizes = [1, 256], strides = [1, 1]} : vector<9x256xf32> to vector<1x256xf32>
    %205 = vector.broadcast %204 : vector<1x256xf32> to vector<16x256xf32>
    %206 = arith.mulf %203, %205 : vector<16x256xf32>
    %207 = arith.truncf %206 : vector<16x256xf32> to vector<16x256xbf16>
    %c112_95 = arith.constant 112 : index
    %c256_96 = arith.constant 256 : index
    %208 = vector.load %arg8[%c112_95, %c256_96] : memref<144x512xbf16, #tpu.memory_space<vmem>>, vector<16x256xbf16>
    tpu.vector_store %arg8[%c112_95, %c256_96], %207 {strides = array<i32>} : memref<144x512xbf16, #tpu.memory_space<vmem>>, vector<16x256xbf16>,
    %c239_i32_97 = arith.constant 239 : i32
    %209 = tpu.dynamic_rotate %164 by %c239_i32_97 dim 1 : vector<16x256xf32>, i32 -> vector<16x256xf32>
    %210 = vector.extract_strided_slice %0 {offsets = [8, 0], sizes = [1, 256], strides = [1, 1]} : vector<9x256xf32> to vector<1x256xf32>
    %211 = vector.broadcast %210 : vector<1x256xf32> to vector<16x256xf32>
    %212 = arith.mulf %209, %211 : vector<16x256xf32>
    %213 = arith.truncf %212 : vector<16x256xf32> to vector<16x256xbf16>
    %c128_98 = arith.constant 128 : index
    %c256_99 = arith.constant 256 : index
    %214 = vector.load %arg8[%c128_98, %c256_99] : memref<144x512xbf16, #tpu.memory_space<vmem>>, vector<16x256xbf16>
    tpu.vector_store %arg8[%c128_98, %c256_99], %213 {strides = array<i32>} : memref<144x512xbf16, #tpu.memory_space<vmem>>, vector<16x256xbf16>,
    %c0_100 = arith.constant 0 : index
    %c0_101 = arith.constant 0 : index
    %215 = vector.load %arg4[%c0_100, %c0_101] : memref<16x144xbf16, #tpu.memory_space<vmem>>, vector<16x144xbf16>
    %c0_102 = arith.constant 0 : index
    %c0_103 = arith.constant 0 : index
    %216 = vector.load %arg8[%c0_102, %c0_103] : memref<144x512xbf16, #tpu.memory_space<vmem>>, vector<144x512xbf16>
    %cst_104 = arith.constant dense<0.000000e+00> : vector<16x512xf32>
    %217 = tpu.matmul %215, %216, %cst_104 {dimension_numbers = #tpu.dot_dimension_numbers<[1], [0], [0], [1], [0, 0, 1, 1], [], []>} : vector<16x144xbf16>, vector<144x512xbf16>, vector<16x512xf32> -> vector<16x512xf32>
    %c0_105 = arith.constant 0 : index
    %c0_106 = arith.constant 0 : index
    %218 = vector.load %arg5[%c0_105, %c0_106] : memref<16x1xf32, #tpu.memory_space<vmem>>, vector<16x1xf32>
    %219 = vector.broadcast %218 : vector<16x1xf32> to vector<16x512xf32>
    %220 = arith.addf %217, %219 : vector<16x512xf32>
    %221 = vector.extract_strided_slice %220 {offsets = [0, 0], sizes = [16, 256], strides = [1, 1]} : vector<16x512xf32> to vector<16x256xf32>
    %c0_107 = arith.constant 0 : index
    %c0_108 = arith.constant 0 : index
    %c0_109 = arith.constant 0 : index
    %222 = vector.load %arg1[%c0_107, %c0_108, %c0_109] : memref<2x16x256xf32, #tpu.memory_space<vmem>>, vector<1x16x256xf32>
    %223 = vector.shape_cast %222 : vector<1x16x256xf32> to vector<16x256xf32>
    %224 = arith.addf %221, %223 : vector<16x256xf32>
    %cst_110 = arith.constant 0.000000e+00 : f32
    %225 = vector.broadcast %cst_110 : f32 to vector<16x256xf32>
    %226 = arith.maximumf %224, %225 : vector<16x256xf32>
    %c0_111 = arith.constant 0 : index
    %c0_112 = arith.constant 0 : index
    %c0_113 = arith.constant 0 : index
    %227 = vector.load %arg7[%c0_111, %c0_112, %c0_113] : memref<2x16x256xf32, #tpu.memory_space<vmem>>, vector<1x16x256xf32>
    %228 = vector.shape_cast %227 : vector<1x16x256xf32> to vector<16x256xf32>
    %229 = vector.shape_cast %226 : vector<16x256xf32> to vector<1x16x256xf32>
    tpu.vector_store %arg7[%c0_111, %c0_112, %c0_113], %229 {strides = array<i32>} : memref<2x16x256xf32, #tpu.memory_space<vmem>>, vector<1x16x256xf32>,
    %230 = vector.extract_strided_slice %220 {offsets = [0, 256], sizes = [16, 256], strides = [1, 1]} : vector<16x512xf32> to vector<16x256xf32>
    %c1_114 = arith.constant 1 : index
    %c0_115 = arith.constant 0 : index
    %c0_116 = arith.constant 0 : index
    %231 = vector.load %arg1[%c1_114, %c0_115, %c0_116] : memref<2x16x256xf32, #tpu.memory_space<vmem>>, vector<1x16x256xf32>
    %232 = vector.shape_cast %231 : vector<1x16x256xf32> to vector<16x256xf32>
    %233 = arith.addf %230, %232 : vector<16x256xf32>
    %cst_117 = arith.constant 0.000000e+00 : f32
    %234 = vector.broadcast %cst_117 : f32 to vector<16x256xf32>
    %235 = arith.maximumf %233, %234 : vector<16x256xf32>
    %c1_118 = arith.constant 1 : index
    %c0_119 = arith.constant 0 : index
    %c0_120 = arith.constant 0 : index
    %236 = vector.load %arg7[%c1_118, %c0_119, %c0_120] : memref<2x16x256xf32, #tpu.memory_space<vmem>>, vector<1x16x256xf32>
    %237 = vector.shape_cast %236 : vector<1x16x256xf32> to vector<16x256xf32>
    %238 = vector.shape_cast %235 : vector<16x256xf32> to vector<1x16x256xf32>
    tpu.vector_store %arg7[%c1_118, %c0_119, %c0_120], %238 {strides = array<i32>} : memref<2x16x256xf32, #tpu.memory_space<vmem>>, vector<1x16x256xf32>,
    return
  }
  func.func @transform_0(%arg0: i32) -> (i32, i32, i32) {
    %c0_i32 = arith.constant 0 : i32
    %c0_i32_0 = arith.constant 0 : i32
    %c0_i32_1 = arith.constant 0 : i32
    return %arg0, %c0_i32, %c0_i32_0 : i32, i32, i32
  }
  func.func @transform_1(%arg0: i32) -> (i32, i32) {
    %c0_i32 = arith.constant 0 : i32
    %c0_i32_0 = arith.constant 0 : i32
    %c0_i32_1 = arith.constant 0 : i32
    return %c0_i32, %c0_i32_0 : i32, i32
  }
  func.func @transform_2(%arg0: i32) -> (i32, i32) {
    %c0_i32 = arith.constant 0 : i32
    %c0_i32_0 = arith.constant 0 : i32
    %c0_i32_1 = arith.constant 0 : i32
    return %c0_i32, %c0_i32_0 : i32, i32
  }
  func.func @transform_3(%arg0: i32) -> (i32, i32) {
    %c0_i32 = arith.constant 0 : i32
    %c0_i32_0 = arith.constant 0 : i32
    %c0_i32_1 = arith.constant 0 : i32
    return %c0_i32, %c0_i32_0 : i32, i32
  }
  func.func @transform_4(%arg0: i32) -> (i32, i32) {
    %c0_i32 = arith.constant 0 : i32
    %c0_i32_0 = arith.constant 0 : i32
    %c0_i32_1 = arith.constant 0 : i32
    return %c0_i32, %c0_i32_0 : i32, i32
  }
  func.func @transform_5(%arg0: i32) -> (i32, i32) {
    %c0_i32 = arith.constant 0 : i32
    %c0_i32_0 = arith.constant 0 : i32
    %c0_i32_1 = arith.constant 0 : i32
    return %c0_i32, %c0_i32_0 : i32, i32
  }
  func.func @transform_6(%arg0: i32) -> (i32, i32, i32) {
    %c0_i32 = arith.constant 0 : i32
    %c0_i32_0 = arith.constant 0 : i32
    %c0_i32_1 = arith.constant 0 : i32
    return %arg0, %c0_i32, %c0_i32_0 : i32, i32, i32
  }
}

</mosaic_0001>

<bundles_post_ra>
// kernel: tpu_custom_call.1
= control target key start
LH: loop header
LB: loop body
LE: loop exit
PB: predicated region body
PF: predicated region fallthrough
CT: control target
= control target key end

     0   :  { %11 = vsyncpa [#allocation4], 0  ;;  %s3261_s0 = inlined_call_operand.hbm [shape: f32[2,16,256], index: 0, kind: input, shape index: {}]   ;;  %s3262_s1 = inlined_call_operand.hbm [shape: bf16[16,144], index: 1, kind: input, shape index: {}]   ;;  %s3263_s2 = inlined_call_operand.vmem [shape: f32[16,1], index: 2, kind: input, shape index: {}]   ;;  %s3264_s3 = inlined_call_operand.hbm [shape: bf16[16,144], index: 3, kind: input, shape index: {}]   ;;  %s3265_s4 = inlined_call_operand.vmem [shape: f32[16,1], index: 4, kind: input, shape index: {}]   ;;  %s3266_s5 = inlined_call_operand.vmem [shape: f32[9,256], index: 5, kind: input, shape index: {}]   ;;  %s3267_s6 = inlined_call_operand.hbm [shape: f32[2,16,256], index: 6, kind: output, shape index: {}]  }
   0x1   :  { %12 = vsyncpa [#allocation7], 0 }
   0x2   :  { %13 = vsyncpa [#allocation5], 0  ;;  %s2293_s21 = smov [#allocation6]  }
   0x3   :  { %s31_s22 = sshll.u32 %s2293_s21, 4  ;;  %s32_s22 = int_to_ptr.vmem [resolvable:$true] %s31_s22 }
   0x4   :  { %s2215_s23 = scalar_lea.vmem %s32_s22, 256  ;;  %p2220_p1 = scmp.lt.s32.totalorder %s32_s22, %s32_s22 }
   0x5   :  { %p2216_p0 = scmp.ne.s32.totalorder %s32_s22, %s2215_s23  ;;  %p2221_p2 = scmp.lt.s32.totalorder %s2215_s23, %s2215_s23 }
   0x7   :  { %p2222_p3 = por %p2221_p2, %p2220_p1 }
   0x9   :  { %p2223_p4 = pnand %p2222_p3, %p2216_p0 }
   0xb   :  { %2226 = shalt.err (!%p2223_p4)
}
   0xc   :  { %s2294_s24 = smov 128   ;;  %s2295_s25 = smov 8  }
   0xd   :  { %37 = dma.hbm_to_vmem [thread:$0]  %s3262_s1, 256, %s32_s22, [#allocation7], %s2294_s24, %s2294_s24, %s2295_s25  }
   0xe   :  { %s2296_s28 = smov [#allocation3]  }
   0xf   :  { %s19_s29 = sshll.u32 %s2296_s28, 4  ;;  %s20_s29 = int_to_ptr.vmem [resolvable:$true] %s19_s29 }
  0x10   :  { %s2235_s30 = scalar_lea.vmem %s20_s29, 1024  ;;  %p2240_p6 = scmp.lt.s32.totalorder %s20_s29, %s20_s29 }
  0x11   :  { %p2236_p5 = scmp.ne.s32.totalorder %s20_s29, %s2235_s30  ;;  %p2241_p7 = scmp.lt.s32.totalorder %s2235_s30, %s2235_s30 }
  0x13   :  { %p2242_p8 = por %p2241_p7, %p2240_p6 }
  0x15   :  { %p2243_p9 = pnand %p2242_p8, %p2236_p5 }
  0x17   :  { %2246 = shalt.err (!%p2243_p9)
}
  0x18   :  { %s2297_s7 = smov 256   ;;  %s2298_s8 = smov 16  }
  0x19   :  { %25 = dma.hbm_to_vmem [thread:$0]  %s3261_s0, 1024, %s20_s29, [#allocation4], %s2297_s7, %s2297_s7, %s2298_s8  }
  0x1a   :  { %s2299_s1 = smov [#allocation8]  }
  0x1b   :  { %s45_s11 = sshll.u32 %s2299_s1, 4  ;;  %s46_s11 = int_to_ptr.vmem [resolvable:$true] %s45_s11 }
  0x1c   :  { %s2255_s12 = scalar_lea.vmem %s46_s11, 256  ;;  %p2260_p11 = scmp.lt.s32.totalorder %s46_s11, %s46_s11 }
  0x1d   :  { %p2256_p10 = scmp.ne.s32.totalorder %s46_s11, %s2255_s12  ;;  %p2261_p12 = scmp.lt.s32.totalorder %s2255_s12, %s2255_s12 }
  0x1f   :  { %p2262_p13 = por %p2261_p12, %p2260_p11 }
  0x21   :  { %p2263_p0 = pnand %p2262_p13, %p2256_p10 }
  0x23   :  { %2266 = shalt.err (!%p2263_p0)
}
  0x24   :  { %51 = dma.hbm_to_vmem [thread:$0]  %s3264_s3, 256, %s46_s11, [#allocation7], %s2294_s24, %s2294_s24, %s2295_s25  }
  0x25   :  { %2287 = dma.done.wait [#allocation4], 1024  }
  0x26   :  { %2288 = vsyncadd [#allocation4], 4294966272 }
  0x27   :  { %2289 = dma.done.wait [#allocation7], 512  }
  0x28   :  { %2290 = vsyncadd [#allocation7], 4294966784  ;;  %v2356_v0 = vld [vmem:[#allocation3 + $0x8] sm:$0xff]  ;;  %v2358_v1 = vld [vmem:[#allocation3] sm:$0xff]  ;;  %s2300_s0 = smov 112   ;;  %s2301_s3 = smov 113   ;;  %v82_v8 = vlaneseq }
  0x29   :  { %328 = vrot.lane.b32.xlu1 %v2356_v0, %s2300_s0  ;;  %324 = vrot.lane.b32.xlu0 %v2358_v1, %s2300_s0  ;;  %v2364_v2 = vld [vmem:[#allocation3 + $0x18] sm:$0xff]  ;;  %v2366_v3 = vld [vmem:[#allocation3 + $0x10] sm:$0xff]  ;;  %v2374_v5 = vld [vmem:[#allocation3 + $0x20] sm:$0xff]  ;;  %s2302_s15 = smov 127   ;;  %s2303_s16 = smov 1   ;;  %vm900_vm0 = vcmask 130048  }
  0x2a   :  { %v2372_v4 = vld [vmem:[#allocation3 + $0x30] sm:$0xff]  ;;  %v2380_v6 = vld [vmem:[#allocation3 + $0x38] sm:$0xff]  ;;  %v2382_v7 = vld [vmem:[#allocation3 + $0x28] sm:$0xff]  ;;  %s2304_s17 = smov 15   ;;  %s2305_s18 = smov 17   ;;  %v2480_v9 = vshrl.u32 %v82_v8, 7 }
  0x2b   :  { %v2486_v10 = vand.u32 127, %v82_v8  ;;  %v2203_v11 = vld [vmem:[#allocation6 + $0x4] ss:$8 sps:$4 sm:$0xff]   ;;  %s2306_s19 = smov 111   ;;  %v2307_v29 = vmov 0  }
  0x2c   :  { %v339_v12 = vsub.s32 7, %v2480_v9  ;;  %v2496_v13 = vld [vmem:[%s3266_s5 + $0x8] sm:$0xff]  ;;  %v2502_v14 = vld [vmem:[%s3266_s5] sm:$0xff]  ;;  %1961 = vmatprep.mubr.msk.bf16.mxu0 %vm900_vm0, %v2203_v11  ;;  %1962 = vmatprep.mubr.msk.bf16.mxu1 %vm900_vm0, %v2203_v11  ;;  %v300_v37 = vsub.s32 6, %v2480_v9 }
  0x2d   :  { %330 = vrot.lane.b32.xlu1 %v2364_v2, %s2300_s0  ;;  %326 = vrot.lane.b32.xlu0 %v2366_v3, %s2300_s0  ;;  %vm332_vm1 = vcmp.lt.s32.totalorder %v2486_v10, 112  ;;  %v700_v34 = vld [vmem:[%s3263_s2 + $0x8] sm:$0xff]  ;;  %v699_v38 = vld [vmem:[%s3263_s2] sm:$0xff]  ;;  %vm293_vm2 = vcmp.lt.s32.totalorder %v2486_v10, 113  ;;  %vm254_vm3 = vcmp.lt.s32.totalorder %v2486_v10, 127  ;;  %vm201_vm4 = vcmp.lt.s32.totalorder %v2486_v10, 1 }
  0x2e   :  { %v2507_v17 = vrot.slane %v2496_v13, %v339_v12  ;;  %v2516_v19 = vrot.slane %v2502_v14, %v339_v12  ;;  %2200 = vset.pattern.permute.xlu1 %v2307_v29  ;;  %2199 = vset.pattern.permute.xlu0 %v2307_v29  ;;  %v2557_v51 = vrot.slane %v2502_v14, %v300_v37  ;;  %vm162_vm5 = vcmp.lt.s32.totalorder %v2486_v10, 15 }
  0x2f   :  { %v2560_v52 = vrot.slane %v2496_v13, %v300_v37  ;;  %vm123_vm6 = vcmp.lt.s32.totalorder %v2486_v10, 16  ;;  %vm84_vm7 = vcmp.lt.s32.totalorder %v2486_v10, 17  ;;  %vm371_vm8 = vcmp.lt.s32.totalorder %v2486_v10, 111 }
  0x31   :  { %603 = vrot.lane.b32.xlu1 %v2372_v4, %s2300_s0  ;;  %601 = vrot.lane.b32.xlu0 %v2374_v5, %s2300_s0 }
  0x35   :  { %607 = vrot.lane.b32.xlu1 %v2380_v6, %s2300_s0  ;;  %605 = vrot.lane.b32.xlu0 %v2382_v7, %s2300_s0 }
  0x39   :  { %287 = vrot.lane.b32.xlu1 %v2366_v3, %s2301_s3  ;;  %285 = vrot.lane.b32.xlu0 %v2358_v1, %s2301_s3 }
  0x3d   :  { %291 = vrot.lane.b32.xlu1 %v2364_v2, %s2301_s3  ;;  %289 = vrot.lane.b32.xlu0 %v2356_v0, %s2301_s3 }
  0x41   :  { %573 = vrot.lane.b32.xlu1 %v2372_v4, %s2301_s3  ;;  %571 = vrot.lane.b32.xlu0 %v2374_v5, %s2301_s3 }
  0x45   :  { %577 = vrot.lane.b32.xlu1 %v2380_v6, %s2301_s3  ;;  %575 = vrot.lane.b32.xlu0 %v2382_v7, %s2301_s3 }
  0x49   :  { %248 = vrot.lane.b32.xlu1 %v2366_v3, %s2302_s15  ;;  %246 = vrot.lane.b32.xlu0 %v2358_v1, %s2302_s15 }
  0x4d   :  { %252 = vrot.lane.b32.xlu1 %v2364_v2, %s2302_s15  ;;  %250 = vrot.lane.b32.xlu0 %v2356_v0, %s2302_s15 }
  0x51   :  { %543 = vrot.lane.b32.xlu1 %v2372_v4, %s2302_s15  ;;  %541 = vrot.lane.b32.xlu0 %v2374_v5, %s2302_s15 }
  0x55   :  { %547 = vrot.lane.b32.xlu1 %v2380_v6, %s2302_s15  ;;  %545 = vrot.lane.b32.xlu0 %v2382_v7, %s2302_s15 }
  0x59   :  { %195 = vrot.lane.b32.xlu1 %v2366_v3, %s2303_s16  ;;  %193 = vrot.lane.b32.xlu0 %v2358_v1, %s2303_s16 }
  0x5d   :  { %199 = vrot.lane.b32.xlu1 %v2364_v2, %s2303_s16  ;;  %197 = vrot.lane.b32.xlu0 %v2356_v0, %s2303_s16 }
  0x61   :  { %499 = vrot.lane.b32.xlu1 %v2372_v4, %s2303_s16  ;;  %497 = vrot.lane.b32.xlu0 %v2374_v5, %s2303_s16 }
  0x65   :  { %503 = vrot.lane.b32.xlu1 %v2380_v6, %s2303_s16  ;;  %501 = vrot.lane.b32.xlu0 %v2382_v7, %s2303_s16 }
  0x69   :  { %156 = vrot.lane.b32.xlu1 %v2366_v3, %s2304_s17  ;;  %154 = vrot.lane.b32.xlu0 %v2358_v1, %s2304_s17 }
  0x6d   :  { %160 = vrot.lane.b32.xlu1 %v2364_v2, %s2304_s17  ;;  %158 = vrot.lane.b32.xlu0 %v2356_v0, %s2304_s17 }
  0x71   :  { %469 = vrot.lane.b32.xlu1 %v2372_v4, %s2304_s17  ;;  %467 = vrot.lane.b32.xlu0 %v2374_v5, %s2304_s17 }
  0x75   :  { %473 = vrot.lane.b32.xlu1 %v2380_v6, %s2304_s17  ;;  %471 = vrot.lane.b32.xlu0 %v2382_v7, %s2304_s17 }
  0x79   :  { %117 = vrot.lane.b32.xlu1 %v2366_v3, %s2298_s8  ;;  %115 = vrot.lane.b32.xlu0 %v2358_v1, %s2298_s8 }
  0x7d   :  { %121 = vrot.lane.b32.xlu1 %v2364_v2, %s2298_s8  ;;  %119 = vrot.lane.b32.xlu0 %v2356_v0, %s2298_s8 }
  0x81   :  { %439 = vrot.lane.b32.xlu1 %v2372_v4, %s2298_s8  ;;  %437 = vrot.lane.b32.xlu0 %v2374_v5, %s2298_s8 }
  0x85   :  { %443 = vrot.lane.b32.xlu1 %v2380_v6, %s2298_s8  ;;  %441 = vrot.lane.b32.xlu0 %v2382_v7, %s2298_s8 }
  0x89   :  { %76 = vrot.lane.b32.xlu1 %v2366_v3, %s2305_s18  ;;  %74 = vrot.lane.b32.xlu0 %v2358_v1, %s2305_s18 }
  0x8d   :  { %80 = vrot.lane.b32.xlu1 %v2364_v2, %s2305_s18  ;;  %78 = vrot.lane.b32.xlu0 %v2356_v0, %s2305_s18 }
  0x91   :  { %409 = vrot.lane.b32.xlu1 %v2372_v4, %s2305_s18  ;;  %407 = vrot.lane.b32.xlu0 %v2374_v5, %s2305_s18 }
  0x95   :  { %413 = vrot.lane.b32.xlu1 %v2380_v6, %s2305_s18  ;;  %411 = vrot.lane.b32.xlu0 %v2382_v7, %s2305_s18 }
  0x99   :  { %365 = vrot.lane.b32.xlu1 %v2366_v3, %s2306_s19  ;;  %363 = vrot.lane.b32.xlu0 %v2358_v1, %s2306_s19 }
  0x9b   :  { %v329_v15 = vpop.permute.xlu1 %328  ;;  %v325_v16 = vpop.permute.xlu0 %324 }
  0x9c   :  { %v335_v18 = vsel %vm332_vm1, %v329_v15, %v325_v16  ;;  %v333_v20 = vsel %vm332_vm1, %v325_v16, %v329_v15 }
  0x9d   :  { %369 = vrot.lane.b32.xlu1 %v2364_v2, %s2306_s19  ;;  %367 = vrot.lane.b32.xlu0 %v2356_v0, %s2306_s19  ;;  %v346_v25 = vmul.f32 %v2507_v17, %v335_v18  ;;  %v345_v27 = vmul.f32 %v2516_v19, %v333_v20  ;;  %v261_v18 = vsub.s32 5, %v2480_v9 }
  0x9f   :  { %v331_v21 = vpop.permute.xlu1 %330  ;;  %v327_v22 = vpop.permute.xlu0 %326 }
  0xa0   :  { %v334_v23 = vsel %vm332_vm1, %v327_v22, %v331_v21  ;;  %v336_v24 = vsel %vm332_vm1, %v331_v21, %v327_v22 }
  0xa1   :  { %633 = vrot.lane.b32.xlu1 %v2372_v4, %s2306_s19  ;;  %631 = vrot.lane.b32.xlu0 %v2374_v5, %s2306_s19  ;;  %v348_v26 = vmul.f32 %v2507_v17, %v336_v24  ;;  %v347_v28 = vmul.f32 %v2516_v19, %v334_v23 }
  0xa3   :  { %v604_v30 = vpop.permute.xlu1 %603  ;;  %v602_v31 = vpop.permute.xlu0 %601  ;;  %v2140_v32 = vpack.c.bf16 %v348_v26, %v346_v25  ;;  %v2139_v33 = vpack.c.bf16 %v347_v28, %v345_v27 }
  0xa5   :  { %637 = vrot.lane.b32.xlu1 %v2380_v6, %s2306_s19  ;;  %635 = vrot.lane.b32.xlu0 %v2382_v7, %s2306_s19 }
  0xa6   :  { %904 = vmatprep.subr.bf16.mxu0 %v2140_v32  ;;  %v2589_v32 = vrot.slane %v2502_v14, %v261_v18 }
  0xa7   :  { %905 = vmatpush1.bf16.msra.mxu0 %v2139_v33  ;;  %v608_v35 = vpop.permute.xlu1 %607  ;;  %v606_v36 = vpop.permute.xlu0 %605  ;;  %v2592_v33 = vrot.slane %v2496_v13, %v261_v18 }
  0xa8   :  { %v610_v39 = vsel %vm332_vm1, %v604_v30, %v608_v35  ;;  %v609_v40 = vsel %vm332_vm1, %v602_v31, %v606_v36  ;;  %v611_v41 = vsel %vm332_vm1, %v606_v36, %v602_v31  ;;  %v612_v42 = vsel %vm332_vm1, %v608_v35, %v604_v30 }
  0xa9   :  { %v614_v43 = vmul.f32 %v611_v41, %v2507_v17  ;;  %v616_v44 = vmul.f32 %v612_v42, %v2507_v17  ;;  %v613_v45 = vmul.f32 %v609_v40, %v2516_v19  ;;  %v615_v46 = vmul.f32 %v610_v39, %v2516_v19  ;;  %708 = vperm.xlu1 %2200, %v700_v34  }
  0xaa   :  { %703 = vperm.xlu0 %2199, %v699_v38  }
  0xab   :  { %v288_v47 = vpop.permute.xlu1 %287  ;;  %v286_v48 = vpop.permute.xlu0 %285  ;;  %v2142_v49 = vpack.c.bf16 %v616_v44, %v614_v43  ;;  %v2141_v50 = vpack.c.bf16 %v615_v46, %v613_v45 }
  0xad   :  { %947 = vmatprep.subr.bf16.mxu1 %v2142_v49  ;;  %v2127_v49 = vpack.c.bf16 %v2366_v3, %v2358_v1 }
  0xae   :  { %948 = vmatpush1.bf16.msra.mxu1 %v2141_v50 }
  0xaf   :  { %v292_v53 = vpop.permute.xlu1 %291  ;;  %v290_v54 = vpop.permute.xlu0 %289 }
  0xb0   :  { %v295_v55 = vsel %vm293_vm2, %v288_v47, %v292_v53  ;;  %v297_v56 = vsel %vm293_vm2, %v292_v53, %v288_v47  ;;  %v294_v57 = vsel %vm293_vm2, %v286_v48, %v290_v54  ;;  %v296_v58 = vsel %vm293_vm2, %v290_v54, %v286_v48 }
  0xb1   :  { %v308_v59 = vmul.f32 %v2557_v51, %v295_v55  ;;  %v309_v60 = vmul.f32 %v2560_v52, %v297_v56  ;;  %v306_v61 = vmul.f32 %v2557_v51, %v294_v57  ;;  %v307_v62 = vmul.f32 %v2560_v52, %v296_v58 }
  0xb2   :  { %v2128_v48 = vpack.c.bf16 %v2364_v2, %v2356_v0  ;;  %v208_v54 = vsub.s32 3, %v2480_v9 }
  0xb3   :  { %v574_v63 = vpop.permute.xlu1 %573  ;;  %v572_v8 = vpop.permute.xlu0 %571  ;;  %v2136_v11 = vpack.c.bf16 %v309_v60, %v307_v62  ;;  %v2135_v12 = vpack.c.bf16 %v308_v59, %v306_v61 }
  0xb5   :  { %906 = vmatprep.subr.bf16.mxu0 %v2136_v11  ;;  %v2630_v11 = vrot.slane %v2496_v13, %v208_v54 }
  0xb6   :  { %907 = vmatpush1.bf16.msra.mxu0 %v2135_v12  ;;  %v2129_v12 = vpack.c.bf16 %v2372_v4, %v2374_v5 }
  0xb7   :  { %v578_v15 = vpop.permute.xlu1 %577  ;;  %v576_v16 = vpop.permute.xlu0 %575 }
  0xb8   :  { %v580_v20 = vsel %vm293_vm2, %v574_v63, %v578_v15  ;;  %v582_v21 = vsel %vm293_vm2, %v578_v15, %v574_v63  ;;  %v579_v22 = vsel %vm293_vm2, %v572_v8, %v576_v16  ;;  %v581_v23 = vsel %vm293_vm2, %v576_v16, %v572_v8 }
  0xb9   :  { %v585_v24 = vmul.f32 %v580_v20, %v2557_v51  ;;  %v586_v25 = vmul.f32 %v582_v21, %v2560_v52  ;;  %v583_v26 = vmul.f32 %v579_v22, %v2557_v51  ;;  %v584_v27 = vmul.f32 %v581_v23, %v2560_v52 }
  0xba   :  { %v2130_v63 = vpack.c.bf16 %v2380_v6, %v2382_v7  ;;  %v2627_v8 = vrot.slane %v2502_v14, %v208_v54 }
  0xbb   :  { %v249_v28 = vpop.permute.xlu1 %248  ;;  %v247_v29 = vpop.permute.xlu0 %246  ;;  %v2138_v30 = vpack.c.bf16 %v586_v25, %v584_v27  ;;  %v2137_v31 = vpack.c.bf16 %v585_v24, %v583_v26 }
  0xbd   :  { %949 = vmatprep.subr.bf16.mxu1 %v2138_v30 }
  0xbe   :  { %950 = vmatpush1.bf16.msra.mxu1 %v2137_v31 }
  0xbf   :  { %v253_v34 = vpop.permute.xlu1 %252  ;;  %v251_v35 = vpop.permute.xlu0 %250 }
  0xc0   :  { %v256_v36 = vsel %vm254_vm3, %v249_v28, %v253_v34  ;;  %v258_v37 = vsel %vm254_vm3, %v253_v34, %v249_v28  ;;  %v255_v38 = vsel %vm254_vm3, %v247_v29, %v251_v35  ;;  %v257_v39 = vsel %vm254_vm3, %v251_v35, %v247_v29 }
  0xc1   :  { %v269_v40 = vmul.f32 %v2589_v32, %v256_v36  ;;  %v270_v41 = vmul.f32 %v2592_v33, %v258_v37  ;;  %v267_v42 = vmul.f32 %v2589_v32, %v255_v38  ;;  %v268_v43 = vmul.f32 %v2592_v33, %v257_v39 }
  0xc2   :  { %v169_v29 = vsub.s32 2, %v2480_v9 }
  0xc3   :  { %v544_v44 = vpop.permute.xlu1 %543  ;;  %v542_v45 = vpop.permute.xlu0 %541  ;;  %v2132_v46 = vpack.c.bf16 %v270_v41, %v268_v43  ;;  %v2131_v47 = vpack.c.bf16 %v269_v40, %v267_v42 }
  0xc5   :  { %908 = vmatprep.subr.bf16.mxu0 %v2132_v46 }
  0xc6   :  { %909 = vmatpush1.bf16.msra.mxu0 %v2131_v47 }
  0xc7   :  { %v548_v50 = vpop.permute.xlu1 %547  ;;  %v546_v53 = vpop.permute.xlu0 %545  ;;  %910 = vmatprep.subr.bf16.mxu0 %v2128_v48 }
  0xc8   :  { %v550_v55 = vsel %vm254_vm3, %v544_v44, %v548_v50  ;;  %v552_v56 = vsel %vm254_vm3, %v548_v50, %v544_v44  ;;  %v549_v57 = vsel %vm254_vm3, %v542_v45, %v546_v53  ;;  %v551_v0 = vsel %vm254_vm3, %v546_v53, %v542_v45 }
  0xc9   :  { %v555_v2 = vmul.f32 %v550_v55, %v2589_v32  ;;  %v556_v1 = vmul.f32 %v552_v56, %v2592_v33  ;;  %v553_v3 = vmul.f32 %v549_v57, %v2589_v32  ;;  %v554_v58 = vmul.f32 %v551_v0, %v2592_v33 }
  0xca   :  { %911 = vmatpush1.bf16.msra.mxu0 %v2127_v49  ;;  %v2661_v44 = vrot.slane %v2502_v14, %v169_v29  ;;  %v2664_v45 = vrot.slane %v2496_v13, %v169_v29 }
  0xcb   :  { %v196_v59 = vpop.permute.xlu1 %195  ;;  %v194_v60 = vpop.permute.xlu0 %193  ;;  %v2134_v61 = vpack.c.bf16 %v556_v1, %v554_v58  ;;  %v2133_v62 = vpack.c.bf16 %v555_v2, %v553_v3 }
  0xcd   :  { %951 = vmatprep.subr.bf16.mxu1 %v2134_v61 }
  0xce   :  { %952 = vmatpush1.bf16.msra.mxu1 %v2133_v62 }
  0xcf   :  { %v200_v15 = vpop.permute.xlu1 %199  ;;  %v198_v16 = vpop.permute.xlu0 %197  ;;  %953 = vmatprep.subr.bf16.mxu1 %v2130_v63 }
  0xd0   :  { %v203_v18 = vsel %vm201_vm4, %v196_v59, %v200_v15  ;;  %v205_v6 = vsel %vm201_vm4, %v200_v15, %v196_v59  ;;  %v202_v7 = vsel %vm201_vm4, %v194_v60, %v198_v16  ;;  %v204_v20 = vsel %vm201_vm4, %v198_v16, %v194_v60 }
  0xd1   :  { %v216_v21 = vmul.f32 %v2627_v8, %v205_v6  ;;  %v217_v22 = vmul.f32 %v2630_v11, %v203_v18  ;;  %v214_v4 = vmul.f32 %v2627_v8, %v204_v20  ;;  %v215_v5 = vmul.f32 %v2630_v11, %v202_v7 }
  0xd2   :  { %954 = vmatpush1.bf16.msra.mxu1 %v2129_v12  ;;  %v130_v60 = vsub.s32 1, %v2480_v9 }
  0xd3   :  { %v500_v23 = vpop.permute.xlu1 %499  ;;  %v498_v24 = vpop.permute.xlu0 %497  ;;  %v2124_v25 = vpack.c.bf16 %v217_v22, %v215_v5  ;;  %v2123_v26 = vpack.c.bf16 %v216_v21, %v214_v4 }
  0xd4   :  { %v2693_v4 = vrot.slane %v2502_v14, %v130_v60  ;;  %v2696_v5 = vrot.slane %v2496_v13, %v130_v60 }
  0xd5   :  { %912 = vmatprep.subr.bf16.mxu0 %v2124_v25 }
  0xd6   :  { %913 = vmatpush1.bf16.msra.mxu0 %v2123_v26 }
  0xd7   :  { %v504_v27 = vpop.permute.xlu1 %503  ;;  %v502_v28 = vpop.permute.xlu0 %501 }
  0xd8   :  { %v506_v30 = vsel %vm201_vm4, %v500_v23, %v504_v27  ;;  %v508_v31 = vsel %vm201_vm4, %v504_v27, %v500_v23  ;;  %v505_v34 = vsel %vm201_vm4, %v498_v24, %v502_v28  ;;  %v507_v35 = vsel %vm201_vm4, %v502_v28, %v498_v24 }
  0xd9   :  { %v511_v36 = vmul.f32 %v508_v31, %v2627_v8  ;;  %v512_v37 = vmul.f32 %v506_v30, %v2630_v11  ;;  %v509_v38 = vmul.f32 %v507_v35, %v2627_v8  ;;  %v510_v39 = vmul.f32 %v505_v34, %v2630_v11 }
  0xdb   :  { %v157_v40 = vpop.permute.xlu1 %156  ;;  %v155_v41 = vpop.permute.xlu0 %154  ;;  %v2126_v42 = vpack.c.bf16 %v512_v37, %v510_v39  ;;  %v2125_v43 = vpack.c.bf16 %v511_v36, %v509_v38 }
  0xdd   :  { %955 = vmatprep.subr.bf16.mxu1 %v2126_v42 }
  0xde   :  { %956 = vmatpush1.bf16.msra.mxu1 %v2125_v43 }
  0xdf   :  { %v161_v46 = vpop.permute.xlu1 %160  ;;  %v159_v47 = vpop.permute.xlu0 %158 }
  0xe0   :  { %v164_v48 = vsel %vm162_vm5, %v157_v40, %v161_v46  ;;  %v166_v49 = vsel %vm162_vm5, %v161_v46, %v157_v40  ;;  %v163_v50 = vsel %vm162_vm5, %v155_v41, %v159_v47  ;;  %v165_v53 = vsel %vm162_vm5, %v159_v47, %v155_v41 }
  0xe1   :  { %v177_v54 = vmul.f32 %v2661_v44, %v166_v49  ;;  %v178_v55 = vmul.f32 %v2664_v45, %v164_v48  ;;  %v175_v56 = vmul.f32 %v2661_v44, %v165_v53  ;;  %v176_v57 = vmul.f32 %v2664_v45, %v163_v50 }
  0xe2   :  { %v91_v41 = vsub.s32 0, %v2480_v9 }
  0xe3   :  { %v470_v0 = vpop.permute.xlu1 %469  ;;  %v468_v2 = vpop.permute.xlu0 %467  ;;  %v2120_v1 = vpack.c.bf16 %v178_v55, %v176_v57  ;;  %v2119_v3 = vpack.c.bf16 %v177_v54, %v175_v56 }
  0xe4   :  { %v2725_v57 = vrot.slane %v2502_v14, %v91_v41 }
  0xe5   :  { %914 = vmatprep.subr.bf16.mxu0 %v2120_v1 }
  0xe6   :  { %915 = vmatpush1.bf16.msra.mxu0 %v2119_v3 }
  0xe7   :  { %v474_v58 = vpop.permute.xlu1 %473  ;;  %v472_v59 = vpop.permute.xlu0 %471 }
  0xe8   :  { %v476_v61 = vsel %vm162_vm5, %v470_v0, %v474_v58  ;;  %v478_v62 = vsel %vm162_vm5, %v474_v58, %v470_v0  ;;  %v475_v63 = vsel %vm162_vm5, %v468_v2, %v472_v59  ;;  %v477_v12 = vsel %vm162_vm5, %v472_v59, %v468_v2 }
  0xe9   :  { %v481_v15 = vmul.f32 %v478_v62, %v2661_v44  ;;  %v482_v16 = vmul.f32 %v476_v61, %v2664_v45  ;;  %v479_v18 = vmul.f32 %v477_v12, %v2661_v44  ;;  %v480_v6 = vmul.f32 %v475_v63, %v2664_v45 }
  0xea   :  { %v2728_v0 = vrot.slane %v2496_v13, %v91_v41 }
  0xeb   :  { %v118_v7 = vpop.permute.xlu1 %117  ;;  %v116_v20 = vpop.permute.xlu0 %115  ;;  %v2122_v21 = vpack.c.bf16 %v482_v16, %v480_v6  ;;  %v2121_v22 = vpack.c.bf16 %v481_v15, %v479_v18 }
  0xed   :  { %957 = vmatprep.subr.bf16.mxu1 %v2122_v21 }
  0xee   :  { %958 = vmatpush1.bf16.msra.mxu1 %v2121_v22 }
  0xef   :  { %v122_v23 = vpop.permute.xlu1 %121  ;;  %v120_v24 = vpop.permute.xlu0 %119 }
  0xf0   :  { %v125_v25 = vsel %vm123_vm6, %v118_v7, %v122_v23  ;;  %v127_v26 = vsel %vm123_vm6, %v122_v23, %v118_v7  ;;  %v124_v27 = vsel %vm123_vm6, %v116_v20, %v120_v24  ;;  %v126_v28 = vsel %vm123_vm6, %v120_v24, %v116_v20 }
  0xf1   :  { %v138_v29 = vmul.f32 %v2693_v4, %v127_v26  ;;  %v139_v30 = vmul.f32 %v2696_v5, %v125_v25  ;;  %v136_v31 = vmul.f32 %v2693_v4, %v126_v28  ;;  %v137_v34 = vmul.f32 %v2696_v5, %v124_v27 }
  0xf3   :  { %v440_v35 = vpop.permute.xlu1 %439  ;;  %v438_v36 = vpop.permute.xlu0 %437  ;;  %v2116_v37 = vpack.c.bf16 %v139_v30, %v137_v34  ;;  %v2115_v38 = vpack.c.bf16 %v138_v29, %v136_v31  ;;  %v2758_v31 = vld [vmem:[%s3266_s5 + $0x10] ss:$0 sm:$0xff]  ;;  %v2763_v34 = vld [vmem:[%s3266_s5 + $0x18] ss:$0 sm:$0xff] }
  0xf4   :  { %3278 = vst [vmem:[#allocation13_spill] sm:$0xff] %v2758_v31  ;;  %3279 = vst [vmem:[#allocation14_spill] sm:$0xff] %v2763_v34 }
  0xf5   :  { %916 = vmatprep.subr.bf16.mxu0 %v2116_v37 }
  0xf6   :  { %917 = vmatpush1.bf16.msra.mxu0 %v2115_v38 }
  0xf7   :  { %v444_v39 = vpop.permute.xlu1 %443  ;;  %v442_v40 = vpop.permute.xlu0 %441 }
  0xf8   :  { %v446_v42 = vsel %vm123_vm6, %v440_v35, %v444_v39  ;;  %v448_v43 = vsel %vm123_vm6, %v444_v39, %v440_v35  ;;  %v445_v46 = vsel %vm123_vm6, %v438_v36, %v442_v40  ;;  %v447_v47 = vsel %vm123_vm6, %v442_v40, %v438_v36 }
  0xf9   :  { %v451_v48 = vmul.f32 %v448_v43, %v2693_v4  ;;  %v452_v49 = vmul.f32 %v446_v42, %v2696_v5  ;;  %v449_v50 = vmul.f32 %v447_v47, %v2693_v4  ;;  %v450_v9 = vmul.f32 %v445_v46, %v2696_v5 }
  0xfb   :  { %v77_v53 = vpop.permute.xlu1 %76  ;;  %v75_v54 = vpop.permute.xlu0 %74  ;;  %v2118_v55 = vpack.c.bf16 %v452_v49, %v450_v9  ;;  %v2117_v56 = vpack.c.bf16 %v451_v48, %v449_v50  ;;  %v2201_v9 = vld [vmem:[#allocation6] ss:$8 sps:$4 sm:$0xff]  }
  0xfd   :  { %959 = vmatprep.subr.bf16.mxu1 %v2118_v55 }
  0xfe   :  { %960 = vmatpush1.bf16.msra.mxu1 %v2117_v56 }
  0xff   :  { %v81_v2 = vpop.permute.xlu1 %80  ;;  %v79_v1 = vpop.permute.xlu0 %78 }
 0x100   :  { %v86_v3 = vsel %vm84_vm7, %v77_v53, %v81_v2  ;;  %v88_v58 = vsel %vm84_vm7, %v81_v2, %v77_v53  ;;  %v85_v59 = vsel %vm84_vm7, %v75_v54, %v79_v1  ;;  %v87_v60 = vsel %vm84_vm7, %v79_v1, %v75_v54 }
 0x101   :  { %v99_v14 = vmul.f32 %v2725_v57, %v88_v58  ;;  %v100_v13 = vmul.f32 %v2728_v0, %v86_v3  ;;  %v97_v61 = vmul.f32 %v2725_v57, %v87_v60  ;;  %v98_v62 = vmul.f32 %v2728_v0, %v85_v59 }
 0x103   :  { %v410_v63 = vpop.permute.xlu1 %409  ;;  %v408_v12 = vpop.permute.xlu0 %407  ;;  %v2112_v15 = vpack.c.bf16 %v100_v13, %v98_v62  ;;  %v2111_v16 = vpack.c.bf16 %v99_v14, %v97_v61 }
 0x105   :  { %918 = vmatprep.subr.bf16.mxu0 %v2112_v15 }
 0x106   :  { %919 = vmatpush1.bf16.msra.mxu0 %v2111_v16 }
 0x107   :  { %v414_v18 = vpop.permute.xlu1 %413  ;;  %v412_v6 = vpop.permute.xlu0 %411 }
 0x108   :  { %v416_v7 = vsel %vm84_vm7, %v410_v63, %v414_v18  ;;  %v418_v20 = vsel %vm84_vm7, %v414_v18, %v410_v63  ;;  %v415_v21 = vsel %vm84_vm7, %v408_v12, %v412_v6  ;;  %v417_v22 = vsel %vm84_vm7, %v412_v6, %v408_v12 }
 0x109   :  { %v421_v23 = vmul.f32 %v418_v20, %v2725_v57  ;;  %v422_v24 = vmul.f32 %v416_v7, %v2728_v0  ;;  %v419_v25 = vmul.f32 %v417_v22, %v2725_v57  ;;  %v420_v26 = vmul.f32 %v415_v21, %v2728_v0 }
 0x10b   :  { %v366_v27 = vpop.permute.xlu1 %365  ;;  %v364_v28 = vpop.permute.xlu0 %363  ;;  %v2114_v29 = vpack.c.bf16 %v422_v24, %v420_v26  ;;  %v2113_v30 = vpack.c.bf16 %v421_v23, %v419_v25 }
 0x10d   :  { %961 = vmatprep.subr.bf16.mxu1 %v2114_v29 }
 0x10e   :  { %962 = vmatpush1.bf16.msra.mxu1 %v2113_v30 }
 0x10f   :  { %v370_v35 = vpop.permute.xlu1 %369  ;;  %v368_v36 = vpop.permute.xlu0 %367 }
 0x110   :  { %v373_v37 = vsel %vm371_vm8, %v366_v27, %v370_v35  ;;  %v375_v38 = vsel %vm371_vm8, %v370_v35, %v366_v27  ;;  %v372_v39 = vsel %vm371_vm8, %v364_v28, %v368_v36  ;;  %v374_v40 = vsel %vm371_vm8, %v368_v36, %v364_v28 }
 0x111   :  { %v386_v41 = vmul.f32 %v2758_v31, %v373_v37  ;;  %v387_v42 = vmul.f32 %v2763_v34, %v375_v38  ;;  %v384_v43 = vmul.f32 %v2758_v31, %v372_v39  ;;  %v385_v46 = vmul.f32 %v2763_v34, %v374_v40 }
 0x113   :  { %v634_v47 = vpop.permute.xlu1 %633  ;;  %v632_v48 = vpop.permute.xlu0 %631  ;;  %v2144_v49 = vpack.c.bf16 %v387_v42, %v385_v46  ;;  %v2143_v50 = vpack.c.bf16 %v386_v41, %v384_v43 }
 0x115   :  { %934 = vmatprep.subr.bf16.mxu0 %v2144_v49 }
 0x116   :  { %935 = vmatpush2.bf16.msra.mxu0 %v2143_v50 }
 0x117   :  { %v638_v53 = vpop.permute.xlu1 %637  ;;  %v636_v54 = vpop.permute.xlu0 %635 }
 0x118   :  { %v640_v55 = vsel %vm371_vm8, %v634_v47, %v638_v53  ;;  %v642_v56 = vsel %vm371_vm8, %v638_v53, %v634_v47  ;;  %v639_v2 = vsel %vm371_vm8, %v632_v48, %v636_v54  ;;  %v641_v1 = vsel %vm371_vm8, %v636_v54, %v632_v48  ;;  %v2204_v48 = vld [vmem:[#allocation8 + $0x4] ss:$8 sps:$4 sm:$0xff]  }
 0x119   :  { %v645_v3 = vmul.f32 %v2758_v31, %v640_v55  ;;  %v646_v58 = vmul.f32 %v2763_v34, %v642_v56  ;;  %v643_v59 = vmul.f32 %v2758_v31, %v639_v2  ;;  %v644_v60 = vmul.f32 %v2763_v34, %v641_v1  ;;  %937 = vmatmul.mubr.bf16.vlgmr.msra.gmra.mxu0 %v2201_v9  ;;  %v1545_v55 = vld [vmem:[%s3265_s4 + $0x8] sm:$0xff] }
 0x11a   :  { %2037 = vmatprep.mubr.msk.bf16.mxu0 %vm900_vm0, %v2204_v48 }
 0x11b   :  { %v2146_v14 = vpack.c.bf16 %v646_v58, %v644_v60  ;;  %v2145_v13 = vpack.c.bf16 %v645_v3, %v643_v59 }
 0x11d   :  { %977 = vmatprep.subr.bf16.mxu1 %v2146_v14 }
 0x11e   :  { %978 = vmatpush2.bf16.msra.mxu1 %v2145_v13 }
 0x121   :  { %980 = vmatmul.mubr.bf16.vlgmr.msra.gmra.mxu1 %v2201_v9  ;;  %v1544_v9 = vld [vmem:[%s3265_s4] sm:$0xff]  ;;  %s2308_s4 = smov [#allocation9]  }
 0x122   :  { %2038 = vmatprep.mubr.msk.bf16.mxu1 %vm900_vm0, %v2204_v48  ;;  %s1872_s11 = sshll.u32 %s2308_s4, 4  ;;  %s1873_s11 = int_to_ptr.vmem [resolvable:$true] %s1872_s11 }
 0x123   :  { %s2267_s12 = scalar_lea.vmem %s1873_s11, 1024  ;;  %p2272_p2 = scmp.lt.s32.totalorder %s1873_s11, %s1873_s11 }
 0x124   :  { %v709_v15 = vpop.permute.xlu1 %708  ;;  %p2268_p1 = scmp.ne.s32.totalorder %s1873_s11, %s2267_s12  ;;  %p2273_p3 = scmp.lt.s32.totalorder %s2267_s12, %s2267_s12 }
 0x125   :  { %v704_v61 = vpop.permute.xlu0 %703 }
 0x126   :  { %p2274_p4 = por %p2273_p3, %p2272_p2 }
 0x128   :  { %p2275_p5 = pnand %p2274_p4, %p2268_p1 }
 0x1d9   :  { %v938_v62 = vpop.f32.mrf.mxu0 }
 0x1da   :  { %v939_v63 = vadd.f32 %v938_v62, %v704_v61 }
 0x1db   :  { %v940_v12 = vpop.f32.mrf.mxu0 }
 0x1dc   :  { %v2789_v16 = vmax.f32 %v939_v63, 0.0  ;;  %v941_v29 = vadd.f32 %v940_v12, %v704_v61 }
 0x1dd   :  { %v942_v18 = vpop.f32.mrf.mxu0 }
 0x1de   :  { %v943_v6 = vadd.f32 %v942_v18, %v709_v15  ;;  %1192 = vrot.lane.b32.xlu1 %v2789_v16, %s2300_s0  ;;  %v2863_v35 = vmax.f32 %v941_v29, 0.0 }
 0x1df   :  { %v944_v30 = vpop.f32.mrf.mxu0 }
 0x1e0   :  { %v2793_v7 = vmax.f32 %v943_v6, 0.0  ;;  %v945_v36 = vadd.f32 %v944_v30, %v709_v15 }
 0x1e1   :  { %v981_v20 = vpop.f32.mrf.mxu1 }
 0x1e2   :  { %v982_v21 = vadd.f32 %v981_v20, %v704_v61  ;;  %1194 = vrot.lane.b32.xlu0 %v2793_v7, %s2300_s0  ;;  %v2869_v39 = vmax.f32 %v945_v36, 0.0 }
 0x1e3   :  { %v983_v23 = vpop.f32.mrf.mxu1 }
 0x1e4   :  { %v2799_v24 = vmax.f32 %v982_v21, 0.0  ;;  %v984_v37 = vadd.f32 %v983_v23, %v704_v61 }
 0x1e5   :  { %v985_v25 = vpop.f32.mrf.mxu1 }
 0x1e6   :  { %v986_v26 = vadd.f32 %v985_v25, %v709_v15  ;;  %1446 = vrot.lane.b32.xlu1 %v2799_v24, %s2300_s0  ;;  %v2871_v40 = vmax.f32 %v984_v37, 0.0 }
 0x1e7   :  { %v987_v38 = vpop.f32.mrf.mxu1 }
 0x1e8   :  { %v2803_v27 = vmax.f32 %v986_v26, 0.0  ;;  %v988_v41 = vadd.f32 %v987_v38, %v709_v15 }
 0x1ea   :  { %1448 = vrot.lane.b32.xlu0 %v2803_v27, %s2300_s0  ;;  %1162 = vrot.lane.b32.xlu1 %v2789_v16, %s2301_s3  ;;  %v2877_v42 = vmax.f32 %v988_v41, 0.0 }
 0x1ee   :  { %1164 = vrot.lane.b32.xlu0 %v2793_v7, %s2301_s3  ;;  %1416 = vrot.lane.b32.xlu1 %v2799_v24, %s2301_s3 }
 0x1f2   :  { %1418 = vrot.lane.b32.xlu0 %v2803_v27, %s2301_s3  ;;  %1132 = vrot.lane.b32.xlu1 %v2789_v16, %s2302_s15 }
 0x1f6   :  { %1134 = vrot.lane.b32.xlu0 %v2793_v7, %s2302_s15  ;;  %1386 = vrot.lane.b32.xlu1 %v2799_v24, %s2302_s15 }
 0x1fa   :  { %1388 = vrot.lane.b32.xlu0 %v2803_v27, %s2302_s15  ;;  %1088 = vrot.lane.b32.xlu1 %v2789_v16, %s2303_s16 }
 0x1fe   :  { %1090 = vrot.lane.b32.xlu0 %v2793_v7, %s2303_s16  ;;  %1342 = vrot.lane.b32.xlu1 %v2799_v24, %s2303_s16 }
 0x202   :  { %1344 = vrot.lane.b32.xlu0 %v2803_v27, %s2303_s16  ;;  %1058 = vrot.lane.b32.xlu1 %v2789_v16, %s2304_s17 }
 0x206   :  { %1060 = vrot.lane.b32.xlu0 %v2793_v7, %s2304_s17  ;;  %1312 = vrot.lane.b32.xlu1 %v2799_v24, %s2304_s17 }
 0x20a   :  { %1314 = vrot.lane.b32.xlu0 %v2803_v27, %s2304_s17  ;;  %1028 = vrot.lane.b32.xlu1 %v2789_v16, %s2298_s8 }
 0x20e   :  { %1030 = vrot.lane.b32.xlu0 %v2793_v7, %s2298_s8  ;;  %1282 = vrot.lane.b32.xlu1 %v2799_v24, %s2298_s8 }
 0x212   :  { %1284 = vrot.lane.b32.xlu0 %v2803_v27, %s2298_s8  ;;  %998 = vrot.lane.b32.xlu1 %v2789_v16, %s2305_s18 }
 0x216   :  { %1000 = vrot.lane.b32.xlu0 %v2793_v7, %s2305_s18  ;;  %1252 = vrot.lane.b32.xlu1 %v2799_v24, %s2305_s18 }
 0x21a   :  { %1254 = vrot.lane.b32.xlu0 %v2803_v27, %s2305_s18  ;;  %1222 = vrot.lane.b32.xlu1 %v2789_v16, %s2306_s19 }
 0x21e   :  { %1224 = vrot.lane.b32.xlu0 %v2793_v7, %s2306_s19  ;;  %1476 = vrot.lane.b32.xlu1 %v2799_v24, %s2306_s19 }
 0x222   :  { %1478 = vrot.lane.b32.xlu0 %v2803_v27, %s2306_s19  ;;  %1196 = vrot.lane.b32.xlu1 %v2863_v35, %s2300_s0 }
 0x226   :  { %1198 = vrot.lane.b32.xlu0 %v2869_v39, %s2300_s0  ;;  %1450 = vrot.lane.b32.xlu1 %v2871_v40, %s2300_s0 }
 0x22a   :  { %1452 = vrot.lane.b32.xlu0 %v2877_v42, %s2300_s0  ;;  %1166 = vrot.lane.b32.xlu1 %v2863_v35, %s2301_s3 }
 0x22e   :  { %1168 = vrot.lane.b32.xlu0 %v2869_v39, %s2301_s3  ;;  %1420 = vrot.lane.b32.xlu1 %v2871_v40, %s2301_s3 }
 0x232   :  { %1422 = vrot.lane.b32.xlu0 %v2877_v42, %s2301_s3  ;;  %1136 = vrot.lane.b32.xlu1 %v2863_v35, %s2302_s15 }
 0x236   :  { %1138 = vrot.lane.b32.xlu0 %v2869_v39, %s2302_s15  ;;  %1390 = vrot.lane.b32.xlu1 %v2871_v40, %s2302_s15 }
 0x23a   :  { %1392 = vrot.lane.b32.xlu0 %v2877_v42, %s2302_s15  ;;  %1092 = vrot.lane.b32.xlu1 %v2863_v35, %s2303_s16 }
 0x23e   :  { %1094 = vrot.lane.b32.xlu0 %v2869_v39, %s2303_s16  ;;  %1346 = vrot.lane.b32.xlu1 %v2871_v40, %s2303_s16 }
 0x242   :  { %1348 = vrot.lane.b32.xlu0 %v2877_v42, %s2303_s16  ;;  %1062 = vrot.lane.b32.xlu1 %v2863_v35, %s2304_s17 }
 0x246   :  { %1064 = vrot.lane.b32.xlu0 %v2869_v39, %s2304_s17  ;;  %1316 = vrot.lane.b32.xlu1 %v2871_v40, %s2304_s17 }
 0x24a   :  { %1318 = vrot.lane.b32.xlu0 %v2877_v42, %s2304_s17  ;;  %1032 = vrot.lane.b32.xlu1 %v2863_v35, %s2298_s8 }
 0x24e   :  { %1034 = vrot.lane.b32.xlu0 %v2869_v39, %s2298_s8  ;;  %1286 = vrot.lane.b32.xlu1 %v2871_v40, %s2298_s8 }
 0x250   :  { %v1193_v43 = vpop.permute.xlu1 %1192 }
 0x252   :  { %1288 = vrot.lane.b32.xlu0 %v2877_v42, %s2298_s8  ;;  %1002 = vrot.lane.b32.xlu1 %v2863_v35, %s2305_s18 }
 0x254   :  { %v1195_v46 = vpop.permute.xlu0 %1194 }
 0x256   :  { %1004 = vrot.lane.b32.xlu0 %v2869_v39, %s2305_s18  ;;  %1256 = vrot.lane.b32.xlu1 %v2871_v40, %s2305_s18 }
 0x258   :  { %v1447_v47 = vpop.permute.xlu1 %1446 }
 0x25a   :  { %1258 = vrot.lane.b32.xlu0 %v2877_v42, %s2305_s18  ;;  %1226 = vrot.lane.b32.xlu1 %v2863_v35, %s2306_s19 }
 0x25c   :  { %v1449_v49 = vpop.permute.xlu0 %1448  ;;  %v1163_v50 = vpop.permute.xlu1 %1162 }
 0x25e   :  { %1228 = vrot.lane.b32.xlu0 %v2869_v39, %s2306_s19  ;;  %1480 = vrot.lane.b32.xlu1 %v2871_v40, %s2306_s19 }
 0x260   :  { %v2940_v53 = vpop.permute.xlu0 %1164  ;;  %v2942_v54 = vpop.permute.xlu1 %1416 }
 0x262   :  { %1482 = vrot.lane.b32.xlu0 %v2877_v42, %s2306_s19  ;;  %1548 = vperm.xlu1 %2200, %v1544_v9  }
 0x264   :  { %v2949_v56 = vpop.permute.xlu0 %1418  ;;  %v2951_v2 = vpop.permute.xlu1 %1132 }
 0x266   :  { %1553 = vperm.xlu0 %2199, %v1545_v55  }
 0x268   :  { %v2953_v1 = vpop.permute.xlu0 %1134  ;;  %v2955_v3 = vpop.permute.xlu1 %1386 }
 0x26c   :  { %v2957_v58 = vpop.permute.xlu0 %1388  ;;  %v2959_v59 = vpop.permute.xlu1 %1088 }
 0x270   :  { %v2961_v60 = vpop.permute.xlu0 %1090  ;;  %v2963_v14 = vpop.permute.xlu1 %1342 }
 0x274   :  { %v2965_v13 = vpop.permute.xlu0 %1344  ;;  %v2967_v61 = vpop.permute.xlu1 %1058 }
 0x278   :  { %v2969_v62 = vpop.permute.xlu0 %1060  ;;  %v2971_v63 = vpop.permute.xlu1 %1312 }
 0x27c   :  { %v2973_v12 = vpop.permute.xlu0 %1314  ;;  %v2975_v15 = vpop.permute.xlu1 %1028 }
 0x280   :  { %v2977_v18 = vpop.permute.xlu0 %1030  ;;  %v2979_v6 = vpop.permute.xlu1 %1282 }
 0x284   :  { %v2981_v20 = vpop.permute.xlu0 %1284  ;;  %v2983_v21 = vpop.permute.xlu1 %998 }
 0x288   :  { %v2985_v23 = vpop.permute.xlu0 %1000  ;;  %v2987_v25 = vpop.permute.xlu1 %1252 }
 0x289   :  { %3280 = vst [vmem:[#allocation15_spill] sm:$0xff] %v2987_v25 }
 0x28c   :  { %v2989_v26 = vpop.permute.xlu0 %1254  ;;  %v2991_v29 = vpop.permute.xlu1 %1222 }
 0x28d   :  { %3281 = vst [vmem:[#allocation16_spill] sm:$0xff] %v2989_v26  ;;  %3282 = vst [vmem:[#allocation17_spill] sm:$0xff] %v2991_v29 }
 0x290   :  { %v2993_v30 = vpop.permute.xlu0 %1224  ;;  %v2995_v36 = vpop.permute.xlu1 %1476 }
 0x291   :  { %3283 = vst [vmem:[#allocation18_spill] sm:$0xff] %v2993_v30  ;;  %3284 = vst [vmem:[#allocation19_spill] sm:$0xff] %v2995_v36 }
 0x294   :  { %v2997_v37 = vpop.permute.xlu0 %1478  ;;  %v1197_v38 = vpop.permute.xlu1 %1196 }
 0x295   :  { %3285 = vst [vmem:[#allocation20_spill] sm:$0xff] %v2997_v37  ;;  %v1200_v41 = vsel %vm332_vm1, %v1193_v43, %v1197_v38  ;;  %v1202_v48 = vsel %vm332_vm1, %v1197_v38, %v1193_v43 }
 0x296   :  { %v1204_v34 = vmul.f32 %v1200_v41, %v2516_v19  ;;  %v1205_v36 = vmul.f32 %v1202_v48, %v2507_v17 }
 0x298   :  { %v1199_v9 = vpop.permute.xlu0 %1198  ;;  %v1451_v55 = vpop.permute.xlu1 %1450 }
 0x299   :  { %v1201_v28 = vsel %vm332_vm1, %v1195_v46, %v1199_v9  ;;  %v1203_v22 = vsel %vm332_vm1, %v1199_v9, %v1195_v46  ;;  %v1454_v30 = vsel %vm332_vm1, %v1447_v47, %v1451_v55  ;;  %v1456_v43 = vsel %vm332_vm1, %v1451_v55, %v1447_v47 }
 0x29a   :  { %v1206_v37 = vmul.f32 %v1201_v28, %v2516_v19  ;;  %v1207_v31 = vmul.f32 %v1203_v22, %v2507_v17  ;;  %v1458_v28 = vmul.f32 %v1454_v30, %v2516_v19  ;;  %v1459_v22 = vmul.f32 %v1456_v43, %v2507_v17 }
 0x29c   :  { %v2175_v38 = vpack.c.bf16 %v1206_v37, %v1204_v34  ;;  %v1453_v29 = vpop.permute.xlu0 %1452  ;;  %v1167_v26 = vpop.permute.xlu1 %1166  ;;  %v2176_v25 = vpack.c.bf16 %v1207_v31, %v1205_v36 }
 0x29d   :  { %v1455_v46 = vsel %vm332_vm1, %v1449_v49, %v1453_v29  ;;  %v1457_v41 = vsel %vm332_vm1, %v1453_v29, %v1449_v49  ;;  %v1170_v34 = vsel %vm293_vm2, %v1163_v50, %v1167_v26  ;;  %v1172_v31 = vsel %vm293_vm2, %v1167_v26, %v1163_v50 }
 0x29e   :  { %v1460_v48 = vmul.f32 %v1455_v46, %v2516_v19  ;;  %v1461_v9 = vmul.f32 %v1457_v41, %v2507_v17  ;;  %1748 = vmatprep.subr.bf16.mxu0 %v2176_v25  ;;  %v1174_v19 = vmul.f32 %v1170_v34, %v2557_v51  ;;  %v1175_v25 = vmul.f32 %v1172_v31, %v2560_v52 }
 0x29f   :  { %1749 = vmatpush1.bf16.msra.mxu0 %v2175_v38 }
 0x2a0   :  { %v2177_v47 = vpack.c.bf16 %v1460_v48, %v1458_v28  ;;  %v1169_v36 = vpop.permute.xlu0 %1168  ;;  %v1421_v37 = vpop.permute.xlu1 %1420  ;;  %v2178_v49 = vpack.c.bf16 %v1461_v9, %v1459_v22 }
 0x2a1   :  { %v1171_v29 = vsel %vm293_vm2, %v2940_v53, %v1169_v36  ;;  %v1173_v17 = vsel %vm293_vm2, %v1169_v36, %v2940_v53  ;;  %v1424_v26 = vsel %vm293_vm2, %v2942_v54, %v1421_v37  ;;  %v1426_v55 = vsel %vm293_vm2, %v1421_v37, %v2942_v54 }
 0x2a2   :  { %v1176_v30 = vmul.f32 %v1171_v29, %v2557_v51  ;;  %v1177_v50 = vmul.f32 %v1173_v17, %v2560_v52  ;;  %1791 = vmatprep.subr.bf16.mxu1 %v2178_v49  ;;  %v1428_v22 = vmul.f32 %v1424_v26, %v2557_v51  ;;  %v1429_v48 = vmul.f32 %v1426_v55, %v2560_v52 }
 0x2a3   :  { %1792 = vmatpush1.bf16.msra.mxu1 %v2177_v47 }
 0x2a4   :  { %v2171_v43 = vpack.c.bf16 %v1176_v30, %v1174_v19  ;;  %v1423_v53 = vpop.permute.xlu0 %1422  ;;  %v1137_v38 = vpop.permute.xlu1 %1136  ;;  %v2172_v46 = vpack.c.bf16 %v1177_v50, %v1175_v25 }
 0x2a5   :  { %v1425_v41 = vsel %vm293_vm2, %v2949_v56, %v1423_v53  ;;  %v1427_v28 = vsel %vm293_vm2, %v1423_v53, %v2949_v56  ;;  %v1140_v34 = vsel %vm254_vm3, %v2951_v2, %v1137_v38  ;;  %v1142_v31 = vsel %vm254_vm3, %v1137_v38, %v2951_v2 }
 0x2a6   :  { %v1430_v9 = vmul.f32 %v1425_v41, %v2557_v51  ;;  %v1431_v54 = vmul.f32 %v1427_v28, %v2560_v52  ;;  %1750 = vmatprep.subr.bf16.mxu0 %v2172_v46  ;;  %v1144_v49 = vmul.f32 %v1140_v34, %v2589_v32  ;;  %v1145_v29 = vmul.f32 %v1142_v31, %v2592_v33 }
 0x2a7   :  { %1751 = vmatpush1.bf16.msra.mxu0 %v2171_v43  ;;  %v2164_v53 = vpack.c.bf16 %v2869_v39, %v2863_v35 }
 0x2a8   :  { %v2173_v47 = vpack.c.bf16 %v1430_v9, %v1428_v22  ;;  %v1139_v56 = vpop.permute.xlu0 %1138  ;;  %v1391_v36 = vpop.permute.xlu1 %1390  ;;  %v2174_v37 = vpack.c.bf16 %v1431_v54, %v1429_v48  ;;  %v2166_v9 = vpack.c.bf16 %v2877_v42, %v2871_v40  ;;  %v3286_v40 = vpack.c.bf16 %v2793_v7, %v2789_v16 }
 0x2a9   :  { %v1141_v51 = vsel %vm254_vm3, %v2953_v1, %v1139_v56  ;;  %v1143_v52 = vsel %vm254_vm3, %v1139_v56, %v2953_v1  ;;  %v1394_v19 = vsel %vm254_vm3, %v2955_v3, %v1391_v36  ;;  %v1396_v25 = vsel %vm254_vm3, %v1391_v36, %v2955_v3 }
 0x2aa   :  { %v1146_v17 = vmul.f32 %v1141_v51, %v2589_v32  ;;  %v1147_v2 = vmul.f32 %v1143_v52, %v2592_v33  ;;  %1793 = vmatprep.subr.bf16.mxu1 %v2174_v37  ;;  %v1398_v38 = vmul.f32 %v1394_v19, %v2589_v32  ;;  %v1399_v3 = vmul.f32 %v1396_v25, %v2592_v33 }
 0x2ab   :  { %1794 = vmatpush1.bf16.msra.mxu1 %v2173_v47 }
 0x2ac   :  { %v2167_v30 = vpack.c.bf16 %v1146_v17, %v1144_v49  ;;  %v1393_v1 = vpop.permute.xlu0 %1392  ;;  %v1093_v50 = vpop.permute.xlu1 %1092  ;;  %v2168_v26 = vpack.c.bf16 %v1147_v2, %v1145_v29 }
 0x2ad   :  { %v1395_v55 = vsel %vm254_vm3, %v2957_v58, %v1393_v1  ;;  %v1397_v43 = vsel %vm254_vm3, %v1393_v1, %v2957_v58  ;;  %v1096_v28 = vsel %vm201_vm4, %v2959_v59, %v1093_v50  ;;  %v1098_v58 = vsel %vm201_vm4, %v1093_v50, %v2959_v59 }
 0x2ae   :  { %v1400_v46 = vmul.f32 %v1395_v55, %v2589_v32  ;;  %v1401_v41 = vmul.f32 %v1397_v43, %v2592_v33  ;;  %1752 = vmatprep.subr.bf16.mxu0 %v2168_v26  ;;  %v1100_v54 = vmul.f32 %v1098_v58, %v2627_v8  ;;  %v1101_v59 = vmul.f32 %v1096_v28, %v2630_v11 }
 0x2af   :  { %1753 = vmatpush1.bf16.msra.mxu0 %v2167_v30 }
 0x2b0   :  { %v2169_v22 = vpack.c.bf16 %v1400_v46, %v1398_v38  ;;  %v1095_v35 = vpop.permute.xlu0 %1094  ;;  %1754 = vmatprep.subr.bf16.mxu0 %v2164_v53  ;;  %v1347_v39 = vpop.permute.xlu1 %1346  ;;  %v2170_v48 = vpack.c.bf16 %v1401_v41, %v1399_v3 }
 0x2b1   :  { %v1097_v32 = vsel %vm201_vm4, %v2961_v60, %v1095_v35  ;;  %v1099_v33 = vsel %vm201_vm4, %v1095_v35, %v2961_v60  ;;  %v1350_v47 = vsel %vm201_vm4, %v2963_v14, %v1347_v39  ;;  %v1352_v60 = vsel %vm201_vm4, %v1347_v39, %v2963_v14 }
 0x2b2   :  { %v1102_v34 = vmul.f32 %v1099_v33, %v2627_v8  ;;  %v1103_v31 = vmul.f32 %v1097_v32, %v2630_v11  ;;  %1795 = vmatprep.subr.bf16.mxu1 %v2170_v48  ;;  %v1354_v14 = vmul.f32 %v1352_v60, %v2627_v8  ;;  %v1355_v49 = vmul.f32 %v1350_v47, %v2630_v11 }
 0x2b3   :  { %1755 = vmatpush1.bf16.msra.mxu0 %v3286_v40  ;;  %1796 = vmatpush1.bf16.msra.mxu1 %v2169_v22 }
 0x2b4   :  { %v2159_v42 = vpack.c.bf16 %v1102_v34, %v1100_v54  ;;  %v1349_v56 = vpop.permute.xlu0 %1348  ;;  %1797 = vmatprep.subr.bf16.mxu1 %v2166_v9  ;;  %v1063_v36 = vpop.permute.xlu1 %1062  ;;  %v2160_v37 = vpack.c.bf16 %v1103_v31, %v1101_v59 }
 0x2b5   :  { %v1351_v51 = vsel %vm201_vm4, %v2965_v13, %v1349_v56  ;;  %v1353_v52 = vsel %vm201_vm4, %v1349_v56, %v2965_v13  ;;  %v1066_v29 = vsel %vm162_vm5, %v2967_v61, %v1063_v36  ;;  %v1068_v17 = vsel %vm162_vm5, %v1063_v36, %v2967_v61 }
 0x2b6   :  { %v1356_v16 = vmul.f32 %v1353_v52, %v2627_v8  ;;  %v1357_v7 = vmul.f32 %v1351_v51, %v2630_v11  ;;  %1756 = vmatprep.subr.bf16.mxu0 %v2160_v37  ;;  %v3287_v13 = vpack.c.bf16 %v2803_v27, %v2799_v24  ;;  %v1070_v1 = vmul.f32 %v1068_v17, %v2661_v44  ;;  %v3288_v17 = vld [vmem:[#allocation15_spill] sm:$0xff] }
 0x2b7   :  { %1757 = vmatpush1.bf16.msra.mxu0 %v2159_v42  ;;  %v1071_v61 = vmul.f32 %v1066_v29, %v2664_v45 }
 0x2b8   :  { %1798 = vmatpush1.bf16.msra.mxu1 %v3287_v13  ;;  %v2161_v2 = vpack.c.bf16 %v1356_v16, %v1354_v14  ;;  %v1065_v19 = vpop.permute.xlu0 %1064  ;;  %v1317_v25 = vpop.permute.xlu1 %1316  ;;  %v2162_v8 = vpack.c.bf16 %v1357_v7, %v1355_v49 }
 0x2b9   :  { %v1067_v11 = vsel %vm162_vm5, %v2969_v62, %v1065_v19  ;;  %v1069_v30 = vsel %vm162_vm5, %v1065_v19, %v2969_v62  ;;  %v1320_v27 = vsel %vm162_vm5, %v2971_v63, %v1317_v25  ;;  %v1322_v26 = vsel %vm162_vm5, %v1317_v25, %v2971_v63 }
 0x2ba   :  { %v1072_v50 = vmul.f32 %v1069_v30, %v2661_v44  ;;  %v1073_v24 = vmul.f32 %v1067_v11, %v2664_v45  ;;  %1799 = vmatprep.subr.bf16.mxu1 %v2162_v8  ;;  %v1324_v46 = vmul.f32 %v1322_v26, %v2661_v44  ;;  %v1325_v41 = vmul.f32 %v1320_v27, %v2664_v45  ;;  %v3289_v11 = vld [vmem:[#allocation16_spill] sm:$0xff]  ;;  %v3290_v26 = vld [vmem:[#allocation17_spill] sm:$0xff] }
 0x2bc   :  { %1800 = vmatpush1.bf16.msra.mxu1 %v2161_v2  ;;  %v2155_v55 = vpack.c.bf16 %v1072_v50, %v1070_v1  ;;  %v1319_v62 = vpop.permute.xlu0 %1318  ;;  %v1033_v43 = vpop.permute.xlu1 %1032  ;;  %v2156_v53 = vpack.c.bf16 %v1073_v24, %v1071_v61 }
 0x2bd   :  { %v1321_v38 = vsel %vm162_vm5, %v2973_v12, %v1319_v62  ;;  %v1323_v3 = vsel %vm162_vm5, %v1319_v62, %v2973_v12  ;;  %v1036_v58 = vsel %vm123_vm6, %v2975_v15, %v1033_v43  ;;  %v1038_v22 = vsel %vm123_vm6, %v1033_v43, %v2975_v15 }
 0x2be   :  { %v1326_v28 = vmul.f32 %v1323_v3, %v2661_v44  ;;  %v1327_v63 = vmul.f32 %v1321_v38, %v2664_v45  ;;  %1758 = vmatprep.subr.bf16.mxu0 %v2156_v53  ;;  %v1040_v32 = vmul.f32 %v1038_v22, %v2693_v4  ;;  %v1041_v33 = vmul.f32 %v1036_v58, %v2696_v5 }
 0x2bf   :  { %1759 = vmatpush1.bf16.msra.mxu0 %v2155_v55 }
 0x2c0   :  { %v2157_v35 = vpack.c.bf16 %v1326_v28, %v1324_v46  ;;  %v1035_v12 = vpop.permute.xlu0 %1034  ;;  %v1287_v39 = vpop.permute.xlu1 %1286  ;;  %v2158_v48 = vpack.c.bf16 %v1327_v63, %v1325_v41  ;;  %v3291_v46 = vld [vmem:[#allocation18_spill] sm:$0xff]  ;;  %v3292_v41 = vld [vmem:[#allocation13_spill] sm:$0xff] }
 0x2c1   :  { %v1037_v44 = vsel %vm123_vm6, %v2977_v18, %v1035_v12  ;;  %v1039_v45 = vsel %vm123_vm6, %v1035_v12, %v2977_v18  ;;  %v1290_v54 = vsel %vm123_vm6, %v2979_v6, %v1287_v39  ;;  %v1292_v59 = vsel %vm123_vm6, %v1287_v39, %v2979_v6  ;;  %v3293_v63 = vld [vmem:[#allocation14_spill] sm:$0xff]  ;;  %v3294_v12 = vld [vmem:[#allocation19_spill] sm:$0xff] }
 0x2c2   :  { %v1042_v9 = vmul.f32 %v1039_v45, %v2693_v4  ;;  %v1043_v15 = vmul.f32 %v1037_v44, %v2696_v5  ;;  %1801 = vmatprep.subr.bf16.mxu1 %v2158_v48  ;;  %v1294_v42 = vmul.f32 %v1292_v59, %v2693_v4  ;;  %v1295_v56 = vmul.f32 %v1290_v54, %v2696_v5 }
 0x2c3   :  { %1802 = vmatpush1.bf16.msra.mxu1 %v2157_v35 }
 0x2c4   :  { %v2151_v34 = vpack.c.bf16 %v1042_v9, %v1040_v32  ;;  %v1289_v18 = vpop.permute.xlu0 %1288  ;;  %v1003_v31 = vpop.permute.xlu1 %1002  ;;  %v2152_v47 = vpack.c.bf16 %v1043_v15, %v1041_v33  ;;  %v3295_v33 = vld [vmem:[#allocation20_spill] sm:$0xff] }
 0x2c5   :  { %v1291_v60 = vsel %vm123_vm6, %v2981_v20, %v1289_v18  ;;  %v1293_v40 = vsel %vm123_vm6, %v1289_v18, %v2981_v20  ;;  %v1006_v37 = vsel %vm84_vm7, %v2983_v21, %v1003_v31  ;;  %v1008_v51 = vsel %vm84_vm7, %v1003_v31, %v2983_v21  ;;  %v2206_v31 = vld [vmem:[#allocation8] ss:$8 sps:$4 sm:$0xff]  }
 0x2c6   :  { %v1296_v36 = vmul.f32 %v1293_v40, %v2693_v4  ;;  %v1297_v6 = vmul.f32 %v1291_v60, %v2696_v5  ;;  %1760 = vmatprep.subr.bf16.mxu0 %v2152_v47  ;;  %v1010_v16 = vmul.f32 %v1008_v51, %v2725_v57  ;;  %v1011_v7 = vmul.f32 %v1006_v37, %v2728_v0 }
 0x2c7   :  { %1761 = vmatpush1.bf16.msra.mxu0 %v2151_v34 }
 0x2c8   :  { %v2153_v52 = vpack.c.bf16 %v1296_v36, %v1294_v42  ;;  %v1005_v20 = vpop.permute.xlu0 %1004  ;;  %v1257_v14 = vpop.permute.xlu1 %1256  ;;  %v2154_v49 = vpack.c.bf16 %v1297_v6, %v1295_v56  ;;  %v1834_v42 = vld [vmem:[#allocation3] sm:$0xff]  ;;  %v1835_v6 = vld [vmem:[#allocation3 + $0x8] sm:$0xff] }
 0x2c9   :  { %v1007_v4 = vsel %vm84_vm7, %v2985_v23, %v1005_v20  ;;  %v1009_v5 = vsel %vm84_vm7, %v1005_v20, %v2985_v23  ;;  %v1260_v13 = vsel %vm84_vm7, %v3288_v17, %v1257_v14  ;;  %v1262_v2 = vsel %vm84_vm7, %v1257_v14, %v3288_v17  ;;  %v1836_v14 = vld [vmem:[#allocation3 + $0x10] sm:$0xff]  ;;  %v1837_v17 = vld [vmem:[#allocation3 + $0x18] sm:$0xff] }
 0x2ca   :  { %v1012_v29 = vmul.f32 %v1009_v5, %v2725_v57  ;;  %v1013_v21 = vmul.f32 %v1007_v4, %v2728_v0  ;;  %1803 = vmatprep.subr.bf16.mxu1 %v2154_v49  ;;  %v1264_v61 = vmul.f32 %v1262_v2, %v2725_v57  ;;  %v1265_v50 = vmul.f32 %v1260_v13, %v2728_v0  ;;  %v1850_v4 = vld [vmem:[#allocation3 + $0x20] sm:$0xff] }
 0x2cb   :  { %1804 = vmatpush1.bf16.msra.mxu1 %v2153_v52 }
 0x2cc   :  { %v2147_v19 = vpack.c.bf16 %v1012_v29, %v1010_v16  ;;  %v1259_v23 = vpop.permute.xlu0 %1258  ;;  %v1227_v25 = vpop.permute.xlu1 %1226  ;;  %v2148_v8 = vpack.c.bf16 %v1013_v21, %v1011_v7 }
 0x2cd   :  { %v1261_v30 = vsel %vm84_vm7, %v3289_v11, %v1259_v23  ;;  %v1263_v1 = vsel %vm84_vm7, %v1259_v23, %v3289_v11  ;;  %v1230_v55 = vsel %vm371_vm8, %v3290_v26, %v1227_v25  ;;  %v1232_v62 = vsel %vm371_vm8, %v1227_v25, %v3290_v26 }
 0x2ce   :  { %v1266_v24 = vmul.f32 %v1263_v1, %v2725_v57  ;;  %v1267_v27 = vmul.f32 %v1261_v30, %v2728_v0  ;;  %1762 = vmatprep.subr.bf16.mxu0 %v2148_v8  ;;  %v1234_v28 = vmul.f32 %v3292_v41, %v1230_v55  ;;  %v1235_v58 = vmul.f32 %v3293_v63, %v1232_v62  ;;  %v1851_v8 = vld [vmem:[#allocation3 + $0x28] sm:$0xff]  ;;  %v1852_v1 = vld [vmem:[#allocation3 + $0x30] sm:$0xff]  ;;  %v1853_v62 = vld [vmem:[#allocation3 + $0x38] sm:$0xff] }
 0x2cf   :  { %1763 = vmatpush1.bf16.msra.mxu0 %v2147_v19 }
 0x2d0   :  { %v2149_v43 = vpack.c.bf16 %v1266_v24, %v1264_v61  ;;  %v1229_v53 = vpop.permute.xlu0 %1228  ;;  %v1481_v38 = vpop.permute.xlu1 %1480  ;;  %v2150_v3 = vpack.c.bf16 %v1267_v27, %v1265_v50 }
 0x2d1   :  { %v1231_v57 = vsel %vm371_vm8, %v3291_v46, %v1229_v53  ;;  %v1233_v0 = vsel %vm371_vm8, %v1229_v53, %v3291_v46  ;;  %v1484_v39 = vsel %vm371_vm8, %v3294_v12, %v1481_v38  ;;  %v1486_v48 = vsel %vm371_vm8, %v1481_v38, %v3294_v12 }
 0x2d2   :  { %v1236_v22 = vmul.f32 %v3292_v41, %v1231_v57  ;;  %v1237_v35 = vmul.f32 %v3293_v63, %v1233_v0  ;;  %1805 = vmatprep.subr.bf16.mxu1 %v2150_v3  ;;  %v1488_v54 = vmul.f32 %v3292_v41, %v1484_v39  ;;  %v1489_v59 = vmul.f32 %v3293_v63, %v1486_v48 }
 0x2d3   :  { %1806 = vmatpush1.bf16.msra.mxu1 %v2149_v43 }
 0x2d4   :  { %v2179_v44 = vpack.c.bf16 %v1236_v22, %v1234_v28  ;;  %v1483_v45 = vpop.permute.xlu0 %1482  ;;  %v2180_v32 = vpack.c.bf16 %v1237_v35, %v1235_v58 }
 0x2d5   :  { %v1485_v9 = vsel %vm371_vm8, %v3295_v33, %v1483_v45  ;;  %v1487_v15 = vsel %vm371_vm8, %v1483_v45, %v3295_v33 }
 0x2d6   :  { %v1490_v34 = vmul.f32 %v3292_v41, %v1485_v9  ;;  %v1491_v18 = vmul.f32 %v3293_v63, %v1487_v15  ;;  %1778 = vmatprep.subr.bf16.mxu0 %v2180_v32 }
 0x2d7   :  { %1779 = vmatpush2.bf16.msra.mxu0 %v2179_v44 }
 0x2d8   :  { %v2181_v47 = vpack.c.bf16 %v1490_v34, %v1488_v54  ;;  %v2182_v60 = vpack.c.bf16 %v1491_v18, %v1489_v59 }
 0x2da   :  { %1781 = vmatmul.mubr.bf16.vlgmr.msra.gmra.mxu0 %v2206_v31  ;;  %1821 = vmatprep.subr.bf16.mxu1 %v2182_v60 }
 0x2db   :  { %1822 = vmatpush2.bf16.msra.mxu1 %v2181_v47 }
 0x2dd   :  { %v1549_v40 = vpop.permute.xlu1 %1548 }
 0x2de   :  { %1824 = vmatmul.mubr.bf16.vlgmr.msra.gmra.mxu1 %v2206_v31 }
 0x2e1   :  { %v1554_v37 = vpop.permute.xlu0 %1553 }
 0x39a   :  { %v1782_v10 = vpop.f32.mrf.mxu0 }
 0x39b   :  { %v1783_v56 = vadd.f32 %v1782_v10, %v1549_v40 }
 0x39c   :  { %v1784_v36 = vpop.f32.mrf.mxu0 }
 0x39d   :  { %v1838_v51 = vadd.f32 %v1834_v42, %v1783_v56  ;;  %v1785_v52 = vadd.f32 %v1784_v36, %v1549_v40 }
 0x39e   :  { %v1786_v20 = vpop.f32.mrf.mxu0  ;;  %v1825_v49 = vpop.f32.mrf.mxu1 }
 0x39f   :  { %v1842_v5 = vmax.f32 %v1838_v51, 0.0  ;;  %v1839_v16 = vadd.f32 %v1835_v6, %v1785_v52  ;;  %v1787_v7 = vadd.f32 %v1786_v20, %v1554_v37  ;;  %v1826_v29 = vadd.f32 %v1825_v49, %v1549_v40 }
 0x3a0   :  { %v1788_v21 = vpop.f32.mrf.mxu0  ;;  %v1827_v13 = vpop.f32.mrf.mxu1 }
 0x3a1   :  { %1846 = vst [vmem:[#allocation9] sm:$0xff] %v1842_v5  ;;  %v1843_v2 = vmax.f32 %v1839_v16, 0.0  ;;  %v1840_v19 = vadd.f32 %v1836_v14, %v1787_v7  ;;  %v1854_v23 = vadd.f32 %v1850_v4, %v1826_v29  ;;  %v1789_v25 = vadd.f32 %v1788_v21, %v1554_v37 }
 0x3a2   :  { %v1828_v11 = vadd.f32 %v1827_v13, %v1549_v40  ;;  %v1829_v30 = vpop.f32.mrf.mxu1 }
 0x3a3   :  { %1847 = vst [vmem:[#allocation9 + $0x8] sm:$0xff] %v1843_v2  ;;  %v1844_v61 = vmax.f32 %v1840_v19, 0.0  ;;  %v1858_v50 = vmax.f32 %v1854_v23, 0.0  ;;  %v1841_v24 = vadd.f32 %v1837_v17, %v1789_v25  ;;  %v1830_v27 = vadd.f32 %v1829_v30, %v1554_v37 }
 0x3a4   :  { %v1855_v26 = vadd.f32 %v1851_v8, %v1828_v11  ;;  %v1831_v55 = vpop.f32.mrf.mxu1 }
 0x3a5   :  { %1848 = vst [vmem:[#allocation9 + $0x10] sm:$0xff] %v1844_v61  ;;  %1863 = vst [vmem:[#allocation9 + $0x20] sm:$0xff] %v1858_v50  ;;  %v1845_v43 = vmax.f32 %v1841_v24, 0.0  ;;  %v1856_v53 = vadd.f32 %v1852_v1, %v1830_v27  ;;  %v1832_v38 = vadd.f32 %v1831_v55, %v1554_v37 }
 0x3a6   :  { %v1859_v3 = vmax.f32 %v1855_v26, 0.0 }
 0x3a7   :  { %1849 = vst [vmem:[#allocation9 + $0x18] sm:$0xff] %v1845_v43  ;;  %v1860_v46 = vmax.f32 %v1856_v53, 0.0  ;;  %v1857_v57 = vadd.f32 %v1853_v62, %v1832_v38 }
 0x3a8   :  { %1864 = vst [vmem:[#allocation9 + $0x28] sm:$0xff] %v1859_v3 }
 0x3a9   :  { %1865 = vst [vmem:[#allocation9 + $0x30] sm:$0xff] %v1860_v46  ;;  %v1861_v0 = vmax.f32 %v1857_v57, 0.0 }
 0x3ab   :  { %1866 = vst [vmem:[#allocation9 + $0x38] sm:$0xff] %v1861_v0 }
 0x3ac   :  { %2278 = shalt.err (!%p2275_p5)
}
 0x3ad   :  { %1878 = dma.vmem_to_hbm [thread:$0]  %s1873_s11, 1024, %s3267_s6, [#allocation5], %s2297_s7, %s2297_s7, %s2298_s8  }
 0x3ae   :  { %2291 = dma.done.wait [#allocation5], 1024  }
 0x3af   :  { %2292 = vsyncadd [#allocation5], 4294966272 }
 0x3b0   :  { %1882 = vsyncpa [#allocation4], 1 }
 0x3b1   :  { %1883 = vsyncpa [#allocation7], 1 }
 0x3b2   :  { %1884 = vsyncpa [#allocation5], 1 }

</bundles_post_ra>
